<compile_context>
chip_gen: v5e
topology: v5e:2x2
jax: 0.10.0
libtpu: 0.0.40
codegen_flags: <defaults>
</compile_context>

<pallas_src>
import functools

import jax
import jax.numpy as jnp
from jax.experimental import pallas as pl
from jax.experimental.pallas import tpu as pltpu

_VMEM = functools.partial(pl.BlockSpec, memory_space=pltpu.MemorySpace.VMEM)

N, C_IN, H, W = 2, 5, 8, 8          # input is (N, 5, 8, 8) NCHW, like PyTorch
R = N * H * W                        # rows of the flattened spatial grid (128)

_CONV_SHIFTS = (0, 1, W, W + 1)          # 2x2 conv taps (dh, dw) on the 8x8 grid
_CONV3_SHIFTS = (0, 2, 2 * W, 2 * W + 2)  # 2x2 conv taps on the stride-2 grid
_POOL_SHIFTS = (1, W, W + 1)              # 2x2/2 max-pool neighbours


# ------------------------------ fused kernel -------------------------------

def _dacnn_kernel(x_ref, bng_ref, bnb_ref,
                  w1_ref, b1_ref, w2_ref, b2_ref, w3_ref, b3_ref,
                  g_ref, wh1_ref, bh1_ref, whd_ref, bhd_ref, out_ref):
    # Correctness note (why rolls need no masking): activations live on the
    # padded full 8x8 grid, (N*H*W, C) rows.  A roll by -s wraps rows
    # r >= 128-s back to the top, and cross-image reads happen near the bottom
    # of image 0; both only ever produce values on rows whose (h, w) is outside
    # the layer's valid region (h or w too large), and each layer only reads
    # the previous layer's VALID region for its own valid rows
    # (conv1: h,w<7; conv2: h,w<6; pool: even h,w<=4; conv3: h,w in {0,2}).
    # The final gather matrix g_ref picks only the 8 valid conv3 rows.
    f32 = jnp.float32

    def shift(a, s):
        # out[r, :] = a[(r + s) % rows, :]   (XLU sublane rotation, no MXU)
        return pltpu.roll(a, a.shape[0] - s, axis=0) if s else a

    def tap_cat(a, shifts):
        # (rows, C) -> (rows, 4*C): lane block t holds the input at tap t.
        return jnp.concatenate([shift(a, s) for s in shifts], axis=1)

    # ---- BatchNorm2d(5): training-mode batch stats, biased var, eps=1e-5 ----
    x = x_ref[...]                                        # (128, 5)
    mean = jnp.mean(x, axis=0, keepdims=True)
    xc = x - mean
    var = jnp.mean(xc * xc, axis=0, keepdims=True)
    a0 = xc * jax.lax.rsqrt(var + 1e-5) * bng_ref[...] + bnb_ref[...]

    # ---- conv1 / conv2: one fused-tap matmul each ----
    a1 = jnp.maximum(jnp.dot(tap_cat(a0, _CONV_SHIFTS), w1_ref[...],
                             preferred_element_type=f32) + b1_ref[...], 0.0)
    a2 = jnp.maximum(jnp.dot(tap_cat(a1, _CONV_SHIFTS), w2_ref[...],
                             preferred_element_type=f32) + b2_ref[...], 0.0)

    # ---- 2x2/2 max-pool via rolls (valid at even (h, w)) ----
    pooled = a2
    for s in _POOL_SHIFTS:
        pooled = jnp.maximum(pooled, shift(a2, s))

    # ---- conv3, evaluated only at its 8 valid output rows ----
    cat3 = tap_cat(pooled, _CONV3_SHIFTS)                             # (128, 128)
    sel_cat = jnp.dot(g_ref[...], cat3, preferred_element_type=f32)    # (8, 128)
    sel = jnp.maximum(jnp.dot(sel_cat, w3_ref[...],
                              preferred_element_type=f32) + b3_ref[...], 0.0)  # (8, 64)
    # sel row r = p*2 + n holds feature (image n, spatial tap p), 64 channels.

    # ---- both fc1 heads fused: one dot + 3 sublane rolls ----
    # wh1 lane block q (128 lanes) holds the merged fc1 rows for tap q; rolling
    # block q up by 2*q aligns image n's tap-q contribution onto row n.
    b = jnp.dot(sel, wh1_ref[...], preferred_element_type=f32)         # (8, 512)
    hidden = b[:, 0:128]
    for q in (1, 2, 3):
        hidden = hidden + shift(b[:, q * 128:(q + 1) * 128], 2 * q)
    hidden = jnp.maximum(hidden + bh1_ref[...], 0.0)                   # (8, 128)

    # ---- both fc2 heads fused into a single lane-dense (8, 128) store ----
    # lanes 0:4 = class logits, 4:6 = domain logits; rows >= N are garbage.
    out_ref[...] = (jnp.dot(hidden, whd_ref[...], preferred_element_type=f32)
                    + bhd_ref[...])


# --------------------------- wrapper / param prep ---------------------------

def prepare_kernel_params(params):
    """One-time re-layout of the PyTorch-style parameters (outside the kernel)."""

    def conv_fused(w_pt):
        # (Cout, Cin, 2, 2) -> (4*Cin, Cout); row index = t*Cin + cin, t = dh*2+dw
        cout, cin = w_pt.shape[0], w_pt.shape[1]
        return jnp.transpose(w_pt, (2, 3, 1, 0)).reshape(4 * cin, cout)

    # 0/1 gather matrix picking the 8 valid conv3 output rows (p-major row
    # order r = p*2 + n, so the head fold can use aligned 128-lane blocks).
    off = (0, 2, 2 * W, 2 * W + 2)                  # p = h3*2 + w3 -> row offset
    row_ids = jnp.array([n * (H * W) + off[p] for p in range(4) for n in range(N)],
                        jnp.int32)
    gather = (row_ids[:, None] == jnp.arange(R)[None, :]).astype(jnp.float32)

    # fc1 of both heads merged (label lanes 0:64, domain 64:128) and re-laid-out
    # so lane block q holds the weights for spatial tap q (PyTorch flatten index
    # is k = c*4 + p, so W1m.reshape(64, 512) gives exactly [c, q*128 + j]).
    w1m = jnp.concatenate([params["lp_w1"].T, params["dc_w1"].T], axis=1)  # (256,128)
    wh1 = w1m.reshape(64, 512)
    bh1 = jnp.concatenate([params["lp_b1"], params["dc_b1"]])[None, :]     # (1,128)

    # fc2 of both heads merged + zero-padded to a lane-dense (128, 128).
    whd = jnp.zeros((128, 128), jnp.float32)
    whd = whd.at[:64, 0:4].set(params["lp_w2"].T)
    whd = whd.at[64:, 4:6].set(params["dc_w2"].T)
    bhd = jnp.zeros((1, 128), jnp.float32)
    bhd = bhd.at[0, 0:4].set(params["lp_b2"])
    bhd = bhd.at[0, 4:6].set(params["dc_b2"])

    return dict(
        bn_g=params["bn_g"][None, :], bn_b=params["bn_b"][None, :],
        w1=conv_fused(params["c1_w"]), b1=params["c1_b"][None, :],
        w2=conv_fused(params["c2_w"]), b2=params["c2_b"][None, :],
        w3=conv_fused(params["c3_w"]), b3=params["c3_b"][None, :],
        gather=gather, wh1=wh1, bh1=bh1, whd=whd, bhd=bhd,
    )


def dacnn_forward_pallas(kp, x_nchw, grl_lambda=1.0):
    del grl_lambda  # gradient reversal only affects the backward pass
    x2d = jnp.transpose(x_nchw, (0, 2, 3, 1)).astype(jnp.float32).reshape(R, C_IN)
    out = pl.pallas_call(
        _dacnn_kernel,
        out_shape=jax.ShapeDtypeStruct((8, 128), jnp.float32),
        in_specs=[_VMEM() for _ in range(14)],
        out_specs=_VMEM(),
    )(x2d, kp["bn_g"], kp["bn_b"],
      kp["w1"], kp["b1"], kp["w2"], kp["b2"], kp["w3"], kp["b3"],
      kp["gather"], kp["wh1"], kp["bh1"], kp["whd"], kp["bhd"])
    return out[:N, 0:4], out[:N, 4:6]


# ----------------------------- pure-JAX reference ---------------------------

def dacnn_forward_ref(params, x_nchw, grl_lambda=1.0):
    del grl_lambda
    x = jnp.transpose(x_nchw, (0, 2, 3, 1)).astype(jnp.float32)  # NHWC
    n, h, w, c = x.shape
    xf = x.reshape(n * h * w, c)
    mean = jnp.mean(xf, axis=0, keepdims=True)
    var = jnp.mean((xf - mean) ** 2, axis=0, keepdims=True)
    xf = ((xf - mean) * jax.lax.rsqrt(var + 1e-5)
          * params["bn_g"][None, :] + params["bn_b"][None, :])
    x = xf.reshape(n, h, w, c)

    def conv(x, wt, b):
        nn_, hh, ww, ci = x.shape
        co = wt.shape[0]
        ho, wo = hh - 1, ww - 1
        patches = jnp.concatenate(
            [x[:, dh:dh + ho, dw:dw + wo, :] for dh in (0, 1) for dw in (0, 1)],
            axis=-1)
        a = patches.reshape(nn_ * ho * wo, 4 * ci)
        w2 = jnp.transpose(wt, (2, 3, 1, 0)).reshape(4 * ci, co)
        out = jnp.maximum(a @ w2 + b[None, :], 0.0)
        return out.reshape(nn_, ho, wo, co)

    x = conv(x, params["c1_w"], params["c1_b"])          # (N,7,7,10)
    x = conv(x, params["c2_w"], params["c2_b"])          # (N,6,6,32)
    nn_, hh, ww, cc = x.shape
    x = jnp.max(x.reshape(nn_, hh // 2, 2, ww // 2, 2, cc), axis=(2, 4))
    x = conv(x, params["c3_w"], params["c3_b"])          # (N,2,2,64)
    feats = jnp.transpose(x, (0, 3, 1, 2)).reshape(nn_, 64 * 2 * 2)
    h1 = jnp.maximum(feats @ params["lp_w1"].T + params["lp_b1"], 0.0)
    cls = h1 @ params["lp_w2"].T + params["lp_b2"]
    h2 = jnp.maximum(feats @ params["dc_w1"].T + params["dc_b1"], 0.0)
    dom = h2 @ params["dc_w2"].T + params["dc_b2"]
    return cls, dom


# ------------------------------ params / main -------------------------------

def init_params(key):
    ks = jax.random.split(key, 16)
    s = 0.1
    return {
        "bn_g": jnp.ones((5,), jnp.float32),
        "bn_b": jnp.zeros((5,), jnp.float32),
        "c1_w": s * jax.random.normal(ks[0], (10, 5, 2, 2), jnp.float32),
        "c1_b": s * jax.random.normal(ks[1], (10,), jnp.float32),
        "c2_w": s * jax.random.normal(ks[2], (32, 10, 2, 2), jnp.float32),
        "c2_b": s * jax.random.normal(ks[3], (32,), jnp.float32),
        "c3_w": s * jax.random.normal(ks[4], (64, 32, 2, 2), jnp.float32),
        "c3_b": s * jax.random.normal(ks[5], (64,), jnp.float32),
        "lp_w1": s * jax.random.normal(ks[6], (64, 256), jnp.float32),
        "lp_b1": s * jax.random.normal(ks[7], (64,), jnp.float32),
        "lp_w2": s * jax.random.normal(ks[8], (4, 64), jnp.float32),
        "lp_b2": s * jax.random.normal(ks[9], (4,), jnp.float32),
        "dc_w1": s * jax.random.normal(ks[10], (64, 256), jnp.float32),
        "dc_b1": s * jax.random.normal(ks[11], (64,), jnp.float32),
        "dc_w2": s * jax.random.normal(ks[12], (2, 64), jnp.float32),
        "dc_b2": s * jax.random.normal(ks[13], (2,), jnp.float32),
    }


if __name__ == "__main__":
    key = jax.random.PRNGKey(0)
    pkey, xkey = jax.random.split(key)
    params = init_params(pkey)
    # Smallest spatial size consistent with flatten(64*2*2): 8x8 input (NCHW).
    x = jax.random.normal(xkey, (N, C_IN, H, W), jnp.float32)

    kparams = prepare_kernel_params(params)      # one-time weight re-layout

    fwd_pallas = jax.jit(dacnn_forward_pallas)
    fwd_ref = jax.jit(dacnn_forward_ref)

    class_pred, domain_pred = fwd_pallas(kparams, x)
    jax.block_until_ready((class_pred, domain_pred))

    class_ref, domain_ref = fwd_ref(params, x)
    jax.block_until_ready((class_ref, domain_ref))

    assert class_pred.shape == (N, 4) and domain_pred.shape == (N, 2)
    assert jnp.allclose(class_pred, class_ref, atol=1e-4, rtol=1e-4)
    assert jnp.allclose(domain_pred, domain_ref, atol=1e-4, rtol=1e-4)

    print("KERNEL_OK")
</pallas_src>

<mosaic_0001>
module attributes {stable_mosaic.version = 11 : i64} {
  func.func @_dacnn_kernel(%arg0: memref<128x5xf32, #tpu.memory_space<vmem>>, %arg1: memref<1x5xf32, #tpu.memory_space<vmem>>, %arg2: memref<1x5xf32, #tpu.memory_space<vmem>>, %arg3: memref<20x10xf32, #tpu.memory_space<vmem>>, %arg4: memref<1x10xf32, #tpu.memory_space<vmem>>, %arg5: memref<40x32xf32, #tpu.memory_space<vmem>>, %arg6: memref<1x32xf32, #tpu.memory_space<vmem>>, %arg7: memref<128x64xf32, #tpu.memory_space<vmem>>, %arg8: memref<1x64xf32, #tpu.memory_space<vmem>>, %arg9: memref<8x128xf32, #tpu.memory_space<vmem>>, %arg10: memref<64x512xf32, #tpu.memory_space<vmem>>, %arg11: memref<1x128xf32, #tpu.memory_space<vmem>>, %arg12: memref<128x128xf32, #tpu.memory_space<vmem>>, %arg13: memref<1x128xf32, #tpu.memory_space<vmem>>, %arg14: memref<8x128xf32, #tpu.memory_space<vmem>>) attributes {dimension_semantics = [], scalar_prefetch = 0 : i64, scratch_operands = 0 : i64, tpu.core_type = #tpu.core_type<tc>} {
    %c0 = arith.constant 0 : index
    %c0_0 = arith.constant 0 : index
    %0 = vector.load %arg0[%c0, %c0_0] : memref<128x5xf32, #tpu.memory_space<vmem>>, vector<128x5xf32>
    %cst = arith.constant dense<0.000000e+00> : vector<5xf32>
    %1 = vector.multi_reduction <add>, %0, %cst [0] : vector<128x5xf32> to vector<5xf32>
    %2 = vector.shape_cast %1 : vector<5xf32> to vector<1x5xf32>
    %cst_1 = arith.constant 1.280000e+02 : f32
    %3 = vector.broadcast %cst_1 : f32 to vector<1x5xf32>
    %4 = arith.divf %2, %3 : vector<1x5xf32>
    %5 = vector.broadcast %4 : vector<1x5xf32> to vector<128x5xf32>
    %6 = arith.subf %0, %5 : vector<128x5xf32>
    %7 = arith.mulf %6, %6 : vector<128x5xf32>
    %cst_2 = arith.constant dense<0.000000e+00> : vector<5xf32>
    %8 = vector.multi_reduction <add>, %7, %cst_2 [0] : vector<128x5xf32> to vector<5xf32>
    %9 = vector.shape_cast %8 : vector<5xf32> to vector<1x5xf32>
    %cst_3 = arith.constant 1.280000e+02 : f32
    %10 = vector.broadcast %cst_3 : f32 to vector<1x5xf32>
    %11 = arith.divf %9, %10 : vector<1x5xf32>
    %cst_4 = arith.constant 9.99999974E-6 : f32
    %12 = vector.broadcast %cst_4 : f32 to vector<1x5xf32>
    %13 = arith.addf %11, %12 : vector<1x5xf32>
    %14 = math.rsqrt %13 : vector<1x5xf32>
    %15 = vector.broadcast %14 : vector<1x5xf32> to vector<128x5xf32>
    %16 = arith.mulf %6, %15 : vector<128x5xf32>
    %c0_5 = arith.constant 0 : index
    %c0_6 = arith.constant 0 : index
    %17 = vector.load %arg1[%c0_5, %c0_6] : memref<1x5xf32, #tpu.memory_space<vmem>>, vector<1x5xf32>
    %18 = vector.broadcast %17 : vector<1x5xf32> to vector<128x5xf32>
    %19 = arith.mulf %16, %18 : vector<128x5xf32>
    %c0_7 = arith.constant 0 : index
    %c0_8 = arith.constant 0 : index
    %20 = vector.load %arg2[%c0_7, %c0_8] : memref<1x5xf32, #tpu.memory_space<vmem>>, vector<1x5xf32>
    %21 = vector.broadcast %20 : vector<1x5xf32> to vector<128x5xf32>
    %22 = arith.addf %19, %21 : vector<128x5xf32>
    %c127_i32 = arith.constant 127 : i32
    %23 = tpu.dynamic_rotate %22 by %c127_i32 dim 0 : vector<128x5xf32>, i32 -> vector<128x5xf32>
    %c120_i32 = arith.constant 120 : i32
    %24 = tpu.dynamic_rotate %22 by %c120_i32 dim 0 : vector<128x5xf32>, i32 -> vector<128x5xf32>
    %c119_i32 = arith.constant 119 : i32
    %25 = tpu.dynamic_rotate %22 by %c119_i32 dim 0 : vector<128x5xf32>, i32 -> vector<128x5xf32>
    %26 = tpu.concatenate %22, %23, %24, %25 in 1 : vector<128x5xf32>, vector<128x5xf32>, vector<128x5xf32>, vector<128x5xf32> -> vector<128x20xf32>
    %c0_9 = arith.constant 0 : index
    %c0_10 = arith.constant 0 : index
    %27 = vector.load %arg3[%c0_9, %c0_10] : memref<20x10xf32, #tpu.memory_space<vmem>>, vector<20x10xf32>
    %cst_11 = arith.constant dense<0.000000e+00> : vector<128x10xf32>
    %28 = tpu.matmul %26, %27, %cst_11 {dimension_numbers = #tpu.dot_dimension_numbers<[1], [0], [0], [1], [0, 0, 1, 1], [], []>} : vector<128x20xf32>, vector<20x10xf32>, vector<128x10xf32> -> vector<128x10xf32>
    %c0_12 = arith.constant 0 : index
    %c0_13 = arith.constant 0 : index
    %29 = vector.load %arg4[%c0_12, %c0_13] : memref<1x10xf32, #tpu.memory_space<vmem>>, vector<1x10xf32>
    %30 = vector.broadcast %29 : vector<1x10xf32> to vector<128x10xf32>
    %31 = arith.addf %28, %30 : vector<128x10xf32>
    %cst_14 = arith.constant 0.000000e+00 : f32
    %32 = vector.broadcast %cst_14 : f32 to vector<128x10xf32>
    %33 = arith.maximumf %31, %32 : vector<128x10xf32>
    %c127_i32_15 = arith.constant 127 : i32
    %34 = tpu.dynamic_rotate %33 by %c127_i32_15 dim 0 : vector<128x10xf32>, i32 -> vector<128x10xf32>
    %c120_i32_16 = arith.constant 120 : i32
    %35 = tpu.dynamic_rotate %33 by %c120_i32_16 dim 0 : vector<128x10xf32>, i32 -> vector<128x10xf32>
    %c119_i32_17 = arith.constant 119 : i32
    %36 = tpu.dynamic_rotate %33 by %c119_i32_17 dim 0 : vector<128x10xf32>, i32 -> vector<128x10xf32>
    %37 = tpu.concatenate %33, %34, %35, %36 in 1 : vector<128x10xf32>, vector<128x10xf32>, vector<128x10xf32>, vector<128x10xf32> -> vector<128x40xf32>
    %c0_18 = arith.constant 0 : index
    %c0_19 = arith.constant 0 : index
    %38 = vector.load %arg5[%c0_18, %c0_19] : memref<40x32xf32, #tpu.memory_space<vmem>>, vector<40x32xf32>
    %cst_20 = arith.constant dense<0.000000e+00> : vector<128x32xf32>
    %39 = tpu.matmul %37, %38, %cst_20 {dimension_numbers = #tpu.dot_dimension_numbers<[1], [0], [0], [1], [0, 0, 1, 1], [], []>} : vector<128x40xf32>, vector<40x32xf32>, vector<128x32xf32> -> vector<128x32xf32>
    %c0_21 = arith.constant 0 : index
    %c0_22 = arith.constant 0 : index
    %40 = vector.load %arg6[%c0_21, %c0_22] : memref<1x32xf32, #tpu.memory_space<vmem>>, vector<1x32xf32>
    %41 = vector.broadcast %40 : vector<1x32xf32> to vector<128x32xf32>
    %42 = arith.addf %39, %41 : vector<128x32xf32>
    %cst_23 = arith.constant 0.000000e+00 : f32
    %43 = vector.broadcast %cst_23 : f32 to vector<128x32xf32>
    %44 = arith.maximumf %42, %43 : vector<128x32xf32>
    %c127_i32_24 = arith.constant 127 : i32
    %45 = tpu.dynamic_rotate %44 by %c127_i32_24 dim 0 : vector<128x32xf32>, i32 -> vector<128x32xf32>
    %46 = arith.maximumf %44, %45 : vector<128x32xf32>
    %c120_i32_25 = arith.constant 120 : i32
    %47 = tpu.dynamic_rotate %44 by %c120_i32_25 dim 0 : vector<128x32xf32>, i32 -> vector<128x32xf32>
    %48 = arith.maximumf %46, %47 : vector<128x32xf32>
    %c119_i32_26 = arith.constant 119 : i32
    %49 = tpu.dynamic_rotate %44 by %c119_i32_26 dim 0 : vector<128x32xf32>, i32 -> vector<128x32xf32>
    %50 = arith.maximumf %48, %49 : vector<128x32xf32>
    %c126_i32 = arith.constant 126 : i32
    %51 = tpu.dynamic_rotate %50 by %c126_i32 dim 0 : vector<128x32xf32>, i32 -> vector<128x32xf32>
    %c112_i32 = arith.constant 112 : i32
    %52 = tpu.dynamic_rotate %50 by %c112_i32 dim 0 : vector<128x32xf32>, i32 -> vector<128x32xf32>
    %c110_i32 = arith.constant 110 : i32
    %53 = tpu.dynamic_rotate %50 by %c110_i32 dim 0 : vector<128x32xf32>, i32 -> vector<128x32xf32>
    %54 = tpu.concatenate %50, %51, %52, %53 in 1 : vector<128x32xf32>, vector<128x32xf32>, vector<128x32xf32>, vector<128x32xf32> -> vector<128x128xf32>
    %c0_27 = arith.constant 0 : index
    %c0_28 = arith.constant 0 : index
    %55 = vector.load %arg9[%c0_27, %c0_28] : memref<8x128xf32, #tpu.memory_space<vmem>>, vector<8x128xf32>
    %cst_29 = arith.constant dense<0.000000e+00> : vector<8x128xf32>
    %56 = tpu.matmul %55, %54, %cst_29 {dimension_numbers = #tpu.dot_dimension_numbers<[1], [0], [0], [1], [0, 0, 1, 1], [], []>} : vector<8x128xf32>, vector<128x128xf32>, vector<8x128xf32> -> vector<8x128xf32>
    %c0_30 = arith.constant 0 : index
    %c0_31 = arith.constant 0 : index
    %57 = vector.load %arg7[%c0_30, %c0_31] : memref<128x64xf32, #tpu.memory_space<vmem>>, vector<128x64xf32>
    %cst_32 = arith.constant dense<0.000000e+00> : vector<8x64xf32>
    %58 = tpu.matmul %56, %57, %cst_32 {dimension_numbers = #tpu.dot_dimension_numbers<[1], [0], [0], [1], [0, 0, 1, 1], [], []>} : vector<8x128xf32>, vector<128x64xf32>, vector<8x64xf32> -> vector<8x64xf32>
    %c0_33 = arith.constant 0 : index
    %c0_34 = arith.constant 0 : index
    %59 = vector.load %arg8[%c0_33, %c0_34] : memref<1x64xf32, #tpu.memory_space<vmem>>, vector<1x64xf32>
    %60 = vector.broadcast %59 : vector<1x64xf32> to vector<8x64xf32>
    %61 = arith.addf %58, %60 : vector<8x64xf32>
    %cst_35 = arith.constant 0.000000e+00 : f32
    %62 = vector.broadcast %cst_35 : f32 to vector<8x64xf32>
    %63 = arith.maximumf %61, %62 : vector<8x64xf32>
    %c0_36 = arith.constant 0 : index
    %c0_37 = arith.constant 0 : index
    %64 = vector.load %arg10[%c0_36, %c0_37] : memref<64x512xf32, #tpu.memory_space<vmem>>, vector<64x512xf32>
    %cst_38 = arith.constant dense<0.000000e+00> : vector<8x512xf32>
    %65 = tpu.matmul %63, %64, %cst_38 {dimension_numbers = #tpu.dot_dimension_numbers<[1], [0], [0], [1], [0, 0, 1, 1], [], []>} : vector<8x64xf32>, vector<64x512xf32>, vector<8x512xf32> -> vector<8x512xf32>
    %66 = vector.extract_strided_slice %65 {offsets = [0, 0], sizes = [8, 128], strides = [1, 1]} : vector<8x512xf32> to vector<8x128xf32>
    %67 = vector.extract_strided_slice %65 {offsets = [0, 128], sizes = [8, 128], strides = [1, 1]} : vector<8x512xf32> to vector<8x128xf32>
    %c6_i32 = arith.constant 6 : i32
    %68 = tpu.dynamic_rotate %67 by %c6_i32 dim 0 : vector<8x128xf32>, i32 -> vector<8x128xf32>
    %69 = arith.addf %66, %68 : vector<8x128xf32>
    %70 = vector.extract_strided_slice %65 {offsets = [0, 256], sizes = [8, 128], strides = [1, 1]} : vector<8x512xf32> to vector<8x128xf32>
    %c4_i32 = arith.constant 4 : i32
    %71 = tpu.dynamic_rotate %70 by %c4_i32 dim 0 : vector<8x128xf32>, i32 -> vector<8x128xf32>
    %72 = arith.addf %69, %71 : vector<8x128xf32>
    %73 = vector.extract_strided_slice %65 {offsets = [0, 384], sizes = [8, 128], strides = [1, 1]} : vector<8x512xf32> to vector<8x128xf32>
    %c2_i32 = arith.constant 2 : i32
    %74 = tpu.dynamic_rotate %73 by %c2_i32 dim 0 : vector<8x128xf32>, i32 -> vector<8x128xf32>
    %75 = arith.addf %72, %74 : vector<8x128xf32>
    %c0_39 = arith.constant 0 : index
    %c0_40 = arith.constant 0 : index
    %76 = vector.load %arg11[%c0_39, %c0_40] : memref<1x128xf32, #tpu.memory_space<vmem>>, vector<1x128xf32>
    %77 = vector.broadcast %76 : vector<1x128xf32> to vector<8x128xf32>
    %78 = arith.addf %75, %77 : vector<8x128xf32>
    %cst_41 = arith.constant 0.000000e+00 : f32
    %79 = vector.broadcast %cst_41 : f32 to vector<8x128xf32>
    %80 = arith.maximumf %78, %79 : vector<8x128xf32>
    %c0_42 = arith.constant 0 : index
    %c0_43 = arith.constant 0 : index
    %81 = vector.load %arg12[%c0_42, %c0_43] : memref<128x128xf32, #tpu.memory_space<vmem>>, vector<128x128xf32>
    %cst_44 = arith.constant dense<0.000000e+00> : vector<8x128xf32>
    %82 = tpu.matmul %80, %81, %cst_44 {dimension_numbers = #tpu.dot_dimension_numbers<[1], [0], [0], [1], [0, 0, 1, 1], [], []>} : vector<8x128xf32>, vector<128x128xf32>, vector<8x128xf32> -> vector<8x128xf32>
    %c0_45 = arith.constant 0 : index
    %c0_46 = arith.constant 0 : index
    %83 = vector.load %arg13[%c0_45, %c0_46] : memref<1x128xf32, #tpu.memory_space<vmem>>, vector<1x128xf32>
    %84 = vector.broadcast %83 : vector<1x128xf32> to vector<8x128xf32>
    %85 = arith.addf %82, %84 : vector<8x128xf32>
    %c0_47 = arith.constant 0 : index
    %c0_48 = arith.constant 0 : index
    %86 = vector.load %arg14[%c0_47, %c0_48] : memref<8x128xf32, #tpu.memory_space<vmem>>, vector<8x128xf32>
    tpu.vector_store %arg14[%c0_47, %c0_48], %85 {strides = array<i32>} : memref<8x128xf32, #tpu.memory_space<vmem>>, vector<8x128xf32>,
    return
  }
}

</mosaic_0001>

<bundles_post_ra>
// kernel: dacnn_forward_pallas.1
= control target key start
LH: loop header
LB: loop body
LE: loop exit
PB: predicated region body
PF: predicated region fallthrough
CT: control target
= control target key end

     0   :  { %19 = vsyncpa [#allocation3], 0  ;;  %s1849_s16 = smov [#allocation2]   ;;  %s1850_s18 = smov 128   ;;  %s3249_s0 = inlined_call_operand.vmem [shape: f32[128,5], index: 0, kind: input, shape index: {}]   ;;  %s3250_s1 = inlined_call_operand.vmem [shape: f32[1,5], index: 1, kind: input, shape index: {}]   ;;  %s3251_s2 = inlined_call_operand.vmem [shape: f32[1,5], index: 2, kind: input, shape index: {}]   ;;  %s3252_s3 = inlined_call_operand.vmem [shape: f32[20,10], index: 3, kind: input, shape index: {}]   ;;  %s3253_s4 = inlined_call_operand.vmem [shape: f32[1,10], index: 4, kind: input, shape index: {}]   ;;  %s3254_s5 = inlined_call_operand.vmem [shape: f32[40,32], index: 5, kind: input, shape index: {}]   ;;  %s3255_s6 = inlined_call_operand.vmem [shape: f32[1,32], index: 6, kind: input, shape index: {}]   ;;  %s3256_s7 = inlined_call_operand.vmem [shape: f32[128,64], index: 7, kind: input, shape index: {}]   ;;  %s3257_s8 = inlined_call_operand.vmem [shape: f32[1,64], index: 8, kind: input, shape index: {}]   ;;  %s3258_s9 = inlined_call_operand.vmem [shape: f32[8,128], index: 9, kind: input, shape index: {}]   ;;  %s3259_s10 = inlined_call_operand.vmem [shape: f32[64,512], index: 10, kind: input, shape index: {}]   ;;  %s3260_s11 = inlined_call_operand.vmem [shape: f32[1,128], index: 11, kind: input, shape index: {}]   ;;  %s3261_s12 = inlined_call_operand.hbm [shape: f32[128,128], index: 12, kind: input, shape index: {}]   ;;  %s3262_s13 = inlined_call_operand.vmem [shape: f32[1,128], index: 13, kind: input, shape index: {}]   ;;  %s3263_s14 = inlined_call_operand.vmem [shape: f32[8,128], index: 14, kind: output, shape index: {}]  }
   0x1   :  { %s48_s15 = sshll.u32 %s3261_s12, 4  ;;  %s50_s17 = sshll.u32 %s1849_s16, 4  ;;  %s49_s15 = int_to_ptr.hbm [resolvable:$true] %s48_s15  ;;  %s51_s17 = int_to_ptr.vmem [resolvable:$true] %s50_s17 }
   0x2   :  { %s1851_s19 = smov 8  }
   0x3   :  { %56 = dma.hbm_to_vmem [thread:$0]  %s49_s15, 2048, %s51_s17, [#allocation3], %s1850_s18, %s1850_s18, %s1851_s19  }
   0x4   :  { %1847 = dma.done.wait [#allocation3], 2048  }
   0x5   :  { %1848 = vsyncadd [#allocation3], 4294965248  ;;  %vm79_vm0 = vcmask 39936   ;;  %v1942_v0 = vld [vmem:[%s3249_s0] sm:$0xff]  ;;  %v1947_v1 = vld [vmem:[%s3249_s0 + $0x8] sm:$0xff]  ;;  %v1852_v30 = vmov 128.0  }
   0x6   :  { %v1952_v2 = vld [vmem:[%s3249_s0 + $0x10] sm:$0xff]  ;;  %v1957_v3 = vld [vmem:[%s3249_s0 + $0x18] sm:$0xff]  ;;  %v80_v4 = vsel %vm79_vm0, %v1942_v0, 0.0  ;;  %v81_v5 = vsel %vm79_vm0, %v1947_v1, 0.0  ;;  %v67_v7 = vld [vmem:[%s3249_s0 + $0x20] sm:$0xff]  ;;  %1819 = vrcp.f32 %v1852_v30  ;;  %s1855_s21 = smov 15  }
   0x7   :  { %v83_v6 = vsel %vm79_vm0, %v1952_v2, 0.0  ;;  %v82_v8 = vadd.f32 %v81_v5, %v80_v4  ;;  %v85_v9 = vsel %vm79_vm0, %v1957_v3, 0.0  ;;  %v68_v10 = vld [vmem:[%s3249_s0 + $0x28] sm:$0xff]  ;;  %v87_v12 = vsel %vm79_vm0, %v67_v7, 0.0  ;;  %v69_v13 = vld [vmem:[%s3249_s0 + $0x30] sm:$0xff]  ;;  %v1980_v15 = vld [vmem:[%s3249_s0 + $0x38] sm:$0xff] }
   0x8   :  { %v89_v16 = vsel %vm79_vm0, %v68_v10, 0.0  ;;  %v91_v18 = vsel %vm79_vm0, %v69_v13, 0.0  ;;  %v1987_v19 = vld [vmem:[%s3249_s0 + $0x40] sm:$0xff]  ;;  %v93_v21 = vsel %vm79_vm0, %v1980_v15, 0.0  ;;  %v1994_v22 = vld [vmem:[%s3249_s0 + $0x48] sm:$0xff]  ;;  %v2001_v25 = vld [vmem:[%s3249_s0 + $0x50] sm:$0xff] }
   0x9   :  { %v84_v11 = vadd.f32 %v83_v6, %v82_v8  ;;  %v95_v24 = vsel %vm79_vm0, %v1987_v19, 0.0  ;;  %v97_v27 = vsel %vm79_vm0, %v1994_v22, 0.0  ;;  %v2008_v28 = vld [vmem:[%s3249_s0 + $0x58] sm:$0xff]  ;;  %v99_v31 = vsel %vm79_vm0, %v2001_v25, 0.0  ;;  %v2015_v32 = vld [vmem:[%s3249_s0 + $0x60] sm:$0xff]  ;;  %v2022_v35 = vld [vmem:[%s3249_s0 + $0x68] sm:$0xff] }
   0xa   :  { %v101_v34 = vsel %vm79_vm0, %v2008_v28, 0.0  ;;  %v103_v37 = vsel %vm79_vm0, %v2015_v32, 0.0  ;;  %v2029_v39 = vld [vmem:[%s3249_s0 + $0x70] sm:$0xff]  ;;  %v105_v41 = vsel %vm79_vm0, %v2022_v35, 0.0  ;;  %v2036_v42 = vld [vmem:[%s3249_s0 + $0x78] sm:$0xff]  ;;  %vm579_vm6 = vcmask 1043456  }
   0xb   :  { %v86_v14 = vadd.f32 %v85_v9, %v84_v11  ;;  %v107_v44 = vsel %vm79_vm0, %v2029_v39, 0.0  ;;  %v109_v47 = vsel %vm79_vm0, %v2036_v42, 0.0  ;;  %vm489_vm7 = vcmask 80896   ;;  %s1857_s28 = smov 20   ;;  %s1860_s22 = smov 32  }
   0xc   :  { %v1820_v38 = vpop.eup %1819  ;;  %vm506_vm8 = vcmask 121856   ;;  %vm530_vm9 = vcmask 162816   ;;  %vm904_vm10 = vcmask 244736   ;;  %vm930_vm11 = vcmask 326656  }
   0xd   :  { %v88_v17 = vadd.f32 %v87_v12, %v86_v14  ;;  %v118_v45 = vmul.f32 128.0, %v1820_v38  ;;  %vm122_vm1 = vweird.f32 %v1820_v38  ;;  %vm1349_vm13 = vcmask 261120  }
   0xe   :  { %vm1366_vm14 = vcmask 523264   ;;  %vm1383_vm15 = vcmask 785408  }
   0xf   :  { %v90_v20 = vadd.f32 %v89_v16, %v88_v17  ;;  %v119_v49 = vsub.f32 1.0, %v118_v45 }
  0x11   :  { %v92_v23 = vadd.f32 %v91_v18, %v90_v20  ;;  %v120_v52 = vmul.f32 %v1820_v38, %v119_v49 }
  0x13   :  { %v94_v26 = vadd.f32 %v93_v21, %v92_v23  ;;  %v121_v55 = vadd.f32 %v1820_v38, %v120_v52 }
  0x15   :  { %v96_v29 = vadd.f32 %v95_v24, %v94_v26  ;;  %v2042_v58 = vsel %vm122_vm1, %v1820_v38, %v121_v55 }
  0x17   :  { %v98_v33 = vadd.f32 %v97_v27, %v96_v29 }
  0x19   :  { %v100_v36 = vadd.f32 %v99_v31, %v98_v33 }
  0x1b   :  { %v102_v40 = vadd.f32 %v101_v34, %v100_v36 }
  0x1d   :  { %v104_v43 = vadd.f32 %v103_v37, %v102_v40 }
  0x1f   :  { %v106_v46 = vadd.f32 %v105_v41, %v104_v43 }
  0x21   :  { %v108_v48 = vadd.f32 %v107_v44, %v106_v46 }
  0x23   :  { %v110_v50 = vadd.f32 %v109_v47, %v108_v48 }
  0x25   :  { %v111_v51 = vrot.slane %v110_v50, 4 }
  0x27   :  { %v112_v53 = vadd.f32 %v111_v51, %v110_v50 }
  0x29   :  { %v113_v54 = vrot.slane %v112_v53, 2 }
  0x2b   :  { %v114_v56 = vadd.f32 %v113_v54, %v112_v53 }
  0x2d   :  { %v115_v57 = vrot.slane %v114_v56, 1 }
  0x2f   :  { %v116_v59 = vadd.f32 %v115_v57, %v114_v56 }
  0x31   :  { %v124_v60 = vmul.f32 %v2042_v58, %v116_v59 }
  0x33   :  { %v2046_v61 = vsub.f32 %v1942_v0, %v124_v60  ;;  %v2049_v62 = vsub.f32 %v1947_v1, %v124_v60  ;;  %v2052_v63 = vsub.f32 %v1952_v2, %v124_v60  ;;  %v2055_v4 = vsub.f32 %v1957_v3, %v124_v60 }
  0x34   :  { %v2057_v5 = vsub.f32 %v67_v7, %v124_v60  ;;  %v2065_v9 = vsub.f32 %v68_v10, %v124_v60  ;;  %v2069_v2 = vsub.f32 %v69_v13, %v124_v60  ;;  %v2077_v16 = vsub.f32 %v1980_v15, %v124_v60 }
  0x35   :  { %v141_v6 = vmul.f32 %v2046_v61, %v2046_v61  ;;  %v142_v8 = vmul.f32 %v2049_v62, %v2049_v62  ;;  %v143_v0 = vmul.f32 %v2052_v63, %v2052_v63  ;;  %v144_v1 = vmul.f32 %v2055_v4, %v2055_v4 }
  0x36   :  { %v145_v3 = vmul.f32 %v2057_v5, %v2057_v5  ;;  %v146_v10 = vmul.f32 %v2065_v9, %v2065_v9  ;;  %v2083_v18 = vsub.f32 %v1987_v19, %v124_v60  ;;  %v147_v20 = vmul.f32 %v2069_v2, %v2069_v2 }
  0x37   :  { %v157_v7 = vsel %vm79_vm0, %v141_v6, 0.0  ;;  %v158_v11 = vsel %vm79_vm0, %v142_v8, 0.0  ;;  %v160_v12 = vsel %vm79_vm0, %v143_v0, 0.0  ;;  %v162_v17 = vsel %vm79_vm0, %v144_v1, 0.0 }
  0x38   :  { %v159_v14 = vadd.f32 %v158_v11, %v157_v7  ;;  %v164_v21 = vsel %vm79_vm0, %v145_v3, 0.0  ;;  %v2089_v24 = vsub.f32 %v1994_v22, %v124_v60  ;;  %v148_v15 = vmul.f32 %v2077_v16, %v2077_v16 }
  0x39   :  { %v166_v26 = vsel %vm79_vm0, %v146_v10, 0.0  ;;  %v2095_v29 = vsub.f32 %v2001_v25, %v124_v60  ;;  %v149_v19 = vmul.f32 %v2083_v18, %v2083_v18  ;;  %v168_v30 = vsel %vm79_vm0, %v147_v20, 0.0 }
  0x3a   :  { %v161_v13 = vadd.f32 %v160_v12, %v159_v14  ;;  %v2101_v33 = vsub.f32 %v2008_v28, %v124_v60  ;;  %v150_v22 = vmul.f32 %v2089_v24, %v2089_v24  ;;  %v170_v34 = vsel %vm79_vm0, %v148_v15, 0.0 }
  0x3b   :  { %v2107_v37 = vsub.f32 %v2015_v32, %v124_v60  ;;  %v151_v25 = vmul.f32 %v2095_v29, %v2095_v29  ;;  %v172_v38 = vsel %vm79_vm0, %v149_v19, 0.0  ;;  %v2113_v41 = vsub.f32 %v2022_v35, %v124_v60 }
  0x3c   :  { %v163_v23 = vadd.f32 %v162_v17, %v161_v13  ;;  %v152_v28 = vmul.f32 %v2101_v33, %v2101_v33  ;;  %v174_v43 = vsel %vm79_vm0, %v150_v22, 0.0  ;;  %v2119_v45 = vsub.f32 %v2029_v39, %v124_v60 }
  0x3d   :  { %v153_v32 = vmul.f32 %v2107_v37, %v2107_v37  ;;  %v176_v46 = vsel %vm79_vm0, %v151_v25, 0.0  ;;  %v2125_v48 = vsub.f32 %v2036_v42, %v124_v60  ;;  %v154_v35 = vmul.f32 %v2113_v41, %v2113_v41 }
  0x3e   :  { %v165_v27 = vadd.f32 %v164_v21, %v163_v23  ;;  %v178_v49 = vsel %vm79_vm0, %v152_v28, 0.0  ;;  %v155_v51 = vmul.f32 %v2119_v45, %v2119_v45  ;;  %v2142_v23 = vld [vmem:[%s3250_s1] ss:$0 sm:$0xff]  ;;  %s1853_s1 = smov 10  }
  0x3f   :  { %v180_v39 = vsel %vm79_vm0, %v153_v32, 0.0  ;;  %v156_v53 = vmul.f32 %v2125_v48, %v2125_v48  ;;  %v182_v54 = vsel %vm79_vm0, %v154_v35, 0.0 }
  0x40   :  { %v167_v31 = vadd.f32 %v166_v26, %v165_v27  ;;  %v184_v42 = vsel %vm79_vm0, %v155_v51, 0.0  ;;  %v2151_v26 = vld [vmem:[%s3251_s2] ss:$0 sm:$0xff]  ;;  %s1854_s2 = smov 5  }
  0x41   :  { %v186_v57 = vsel %vm79_vm0, %v156_v53, 0.0 }
  0x42   :  { %v169_v36 = vadd.f32 %v168_v30, %v167_v31  ;;  %v278_v30 = vlaneseq }
  0x44   :  { %v171_v40 = vadd.f32 %v170_v34, %v169_v36 }
  0x46   :  { %v173_v44 = vadd.f32 %v172_v38, %v171_v40 }
  0x48   :  { %v175_v47 = vadd.f32 %v174_v43, %v173_v44 }
  0x4a   :  { %v177_v50 = vadd.f32 %v176_v46, %v175_v47 }
  0x4c   :  { %v179_v52 = vadd.f32 %v178_v49, %v177_v50 }
  0x4e   :  { %v181_v55 = vadd.f32 %v180_v39, %v179_v52 }
  0x50   :  { %v183_v56 = vadd.f32 %v182_v54, %v181_v55 }
  0x52   :  { %v185_v59 = vadd.f32 %v184_v42, %v183_v56 }
  0x54   :  { %v187_v60 = vadd.f32 %v186_v57, %v185_v59 }
  0x56   :  { %v188_v6 = vrot.slane %v187_v60, 4 }
  0x58   :  { %v189_v8 = vadd.f32 %v188_v6, %v187_v60 }
  0x5a   :  { %v190_v0 = vrot.slane %v189_v8, 2 }
  0x5c   :  { %v191_v1 = vadd.f32 %v190_v0, %v189_v8 }
  0x5e   :  { %v192_v3 = vrot.slane %v191_v1, 1 }
  0x60   :  { %v193_v7 = vadd.f32 %v192_v3, %v191_v1 }
  0x62   :  { %v194_v11 = vmul.f32 %v193_v7, %v2042_v58 }
  0x64   :  { %v195_v12 = vadd.f32 1e-05, %v194_v11 }
  0x66   :  { %1821 = vrsqrt.f32 %v195_v12  ;;  %vm202_vm2 = vweird.f32 %v195_v12 }
  0x6c   :  { %v1822_v14 = vpop.eup %1821 }
  0x6d   :  { %v197_v10 = vmul.f32 %v1822_v14, %v195_v12  ;;  %vm203_vm3 = vweird.f32 %v1822_v14 }
  0x6e   :  { %vm204_vm4 = vmor %vm202_vm2, %vm203_vm3 }
  0x6f   :  { %v198_v17 = vmul.f32 %v1822_v14, %v197_v10 }
  0x71   :  { %v199_v13 = vmul.f32 0.5, %v198_v17 }
  0x73   :  { %v200_v20 = vsub.f32 1.5, %v199_v13 }
  0x75   :  { %v201_v21 = vmul.f32 %v1822_v14, %v200_v20 }
  0x77   :  { %v2144_v15 = vsel %vm204_vm4, %v1822_v14, %v201_v21 }
  0x78   :  { %v209_v58 = vmul.f32 %v2144_v15, %v2055_v4  ;;  %v207_v27 = vmul.f32 %v2144_v15, %v2049_v62  ;;  %v206_v19 = vmul.f32 %v2144_v15, %v2046_v61  ;;  %v208_v31 = vmul.f32 %v2144_v15, %v2052_v63 }
  0x79   :  { %v210_v4 = vmul.f32 %v2144_v15, %v2057_v5  ;;  %v2174_v63 = vshrl.u32 %v278_v30, 7  ;;  %v211_v49 = vmul.f32 %v2144_v15, %v2065_v9  ;;  %v212_v9 = vmul.f32 %v2144_v15, %v2069_v2 }
  0x7a   :  { %v229_v22 = vmul.f32 %v2142_v23, %v209_v58  ;;  %v227_v34 = vmul.f32 %v2142_v23, %v207_v27  ;;  %v226_v36 = vmul.f32 %v2142_v23, %v206_v19  ;;  %v228_v25 = vmul.f32 %v2142_v23, %v208_v31 }
  0x7b   :  { %v230_v5 = vmul.f32 %v2142_v23, %v210_v4  ;;  %vm280_vm5 = vcmp.lt.s32.totalorder %v2174_v63, 7  ;;  %v231_v51 = vmul.f32 %v2142_v23, %v211_v49  ;;  %v232_v55 = vmul.f32 %v2142_v23, %v212_v9  ;;  %v523_v9 = vld [vmem:[%s3252_s3] sm:$0xff] }
  0x7c   :  { %v2166_v62 = vadd.f32 %v2151_v26, %v229_v22  ;;  %v2169_v61 = vadd.f32 %v2151_v26, %v227_v34  ;;  %v2172_v38 = vadd.f32 %v2151_v26, %v226_v36  ;;  %v2177_v40 = vadd.f32 %v2151_v26, %v228_v25 }
  0x7d   :  { %v2190_v44 = vadd.f32 %v2151_v26, %v230_v5  ;;  %v2218_v53 = vadd.f32 %v2151_v26, %v231_v51  ;;  %v2230_v56 = vadd.f32 %v2151_v26, %v232_v55  ;;  %v213_v57 = vmul.f32 %v2144_v15, %v2077_v16  ;;  %v525_v51 = vld [vmem:[%s3252_s3 + $0x10] sm:$0xf] }
  0x7e   :  { %381 = vrot.lane.b32.xlu1 %v2166_v62, %s1853_s1  ;;  %377 = vrot.lane.b32.xlu0 %v2169_v61, %s1853_s1  ;;  %v262_v28 = vrot.slane %v2172_v38, 1  ;;  %v263_v43 = vrot.slane %v2169_v61, 1  ;;  %v264_v32 = vrot.slane %v2177_v40, 1  ;;  %v265_v46 = vrot.slane %v2166_v62, 1 }
  0x7f   :  { %379 = vrot.lane.b32.xlu2 %v2177_v40, %s1853_s1  ;;  %v266_v50 = vrot.slane %v2190_v44, 1  ;;  %v267_v54 = vrot.slane %v2218_v53, 1  ;;  %v268_v2 = vrot.slane %v2230_v56, 1  ;;  %v233_v59 = vmul.f32 %v2142_v23, %v213_v57  ;;  %1635 = vmatpush.msk.msra.mxu0 %vm579_vm6, %v525_v51 }
  0x80   :  { %v2198_v47 = vsel %vm280_vm5, %v262_v28, %v263_v43  ;;  %v293_v35 = vsel %vm280_vm5, %v264_v32, %v265_v46  ;;  %v294_v39 = vsel %vm280_vm5, %v263_v43, %v264_v32  ;;  %v214_v16 = vmul.f32 %v2144_v15, %v2083_v18  ;;  %1672 = vmatpush.msk.msra.mxu3 %vm579_vm6, %v525_v51 }
  0x81   :  { %v292_v52 = vsel %vm280_vm5, %v265_v46, %v266_v50  ;;  %v291_v42 = vsel %vm280_vm5, %v266_v50, %v267_v54  ;;  %v290_v60 = vsel %vm280_vm5, %v267_v54, %v268_v2  ;;  %v2243_v6 = vadd.f32 %v2151_v26, %v233_v59 }
  0x82   :  { %v234_v0 = vmul.f32 %v2142_v23, %v214_v16  ;;  %v215_v18 = vmul.f32 %v2144_v15, %v2089_v24  ;;  %v216_v24 = vmul.f32 %v2144_v15, %v2095_v29  ;;  %v217_v29 = vmul.f32 %v2144_v15, %v2101_v33 }
  0x83   :  { %v269_v8 = vrot.slane %v2243_v6, 1  ;;  %v218_v33 = vmul.f32 %v2144_v15, %v2107_v37  ;;  %v219_v22 = vmul.f32 %v2144_v15, %v2113_v41  ;;  %v220_v34 = vmul.f32 %v2144_v15, %v2119_v45 }
  0x84   :  { %v2256_v3 = vadd.f32 %v2151_v26, %v234_v0  ;;  %v235_v11 = vmul.f32 %v2142_v23, %v215_v18  ;;  %v236_v17 = vmul.f32 %v2142_v23, %v216_v24  ;;  %v237_v58 = vmul.f32 %v2142_v23, %v217_v29 }
  0x85   :  { %v289_v1 = vsel %vm280_vm5, %v268_v2, %v269_v8  ;;  %v238_v31 = vmul.f32 %v2142_v23, %v218_v33  ;;  %v221_v36 = vmul.f32 %v2144_v15, %v2125_v48  ;;  %v239_v25 = vmul.f32 %v2142_v23, %v219_v22 }
  0x86   :  { %383 = vrot.lane.b32.xlu1 %v2190_v44, %s1853_s1  ;;  %313 = vrot.lane.b32.xlu0 %v2198_v47, %s1854_s2  ;;  %v270_v7 = vrot.slane %v2256_v3, 1  ;;  %v2269_v14 = vadd.f32 %v2151_v26, %v235_v11  ;;  %v2282_v20 = vadd.f32 %v2151_v26, %v236_v17  ;;  %v2295_v19 = vadd.f32 %v2151_v26, %v237_v58 }
  0x87   :  { %427 = vrot.lane.b32.xlu2 %v293_v35, %s1855_s21  ;;  %v2312_v4 = vadd.f32 %v2151_v26, %v238_v31  ;;  %v240_v41 = vmul.f32 %v2142_v23, %v220_v34  ;;  %v241_v5 = vmul.f32 %v2142_v23, %v221_v36  ;;  %v2322_v43 = vadd.f32 %v2151_v26, %v239_v25 }
  0x88   :  { %v288_v12 = vsel %vm280_vm5, %v269_v8, %v270_v7  ;;  %v271_v10 = vrot.slane %v2269_v14, 1  ;;  %v272_v21 = vrot.slane %v2282_v20, 1  ;;  %v273_v30 = vrot.slane %v2295_v19, 1 }
  0x89   :  { %v274_v45 = vrot.slane %v2312_v4, 1  ;;  %v2325_v32 = vadd.f32 %v2151_v26, %v240_v41  ;;  %v2333_v15 = vadd.f32 %v2151_v26, %v241_v5  ;;  %v275_v46 = vrot.slane %v2322_v43, 1 }
  0x8a   :  { %v287_v13 = vsel %vm280_vm5, %v270_v7, %v271_v10  ;;  %v286_v27 = vsel %vm280_vm5, %v271_v10, %v272_v21  ;;  %v285_v37 = vsel %vm280_vm5, %v272_v21, %v273_v30  ;;  %vm1156_vm12 = vcmp.lt.s32.totalorder %v2174_v63, 6 }
  0x8b   :  { %v284_v48 = vsel %vm280_vm5, %v273_v30, %v274_v45  ;;  %v276_v23 = vrot.slane %v2325_v32, 1 }
  0x8d   :  { %v282_v49 = vsel %vm280_vm5, %v275_v46, %v276_v23 }
  0x8e   :  { %425 = vrot.lane.b32.xlu1 %v294_v39, %s1855_s21  ;;  %317 = vrot.lane.b32.xlu0 %v293_v35, %s1854_s2  ;;  %v277_v35 = vrot.slane %v2333_v15, 1 }
  0x8f   :  { %429 = vrot.lane.b32.xlu2 %v292_v52, %s1855_s21 }
  0x90   :  { %v281_v26 = vsel %vm280_vm5, %v276_v23, %v277_v35  ;;  %v296_v55 = vsel %vm280_vm5, %v277_v35, %v262_v28 }
  0x96   :  { %315 = vrot.lane.b32.xlu1 %v294_v39, %s1854_s2  ;;  %319 = vrot.lane.b32.xlu0 %v292_v52, %s1854_s2  ;;  %v524_v39 = vld [vmem:[%s3252_s3 + $0x8] sm:$0xff]  ;;  %v283_v52 = vsel %vm280_vm5, %v274_v45, %v275_v46 }
  0x97   :  { %431 = vrot.lane.b32.xlu2 %v291_v42, %s1855_s21  ;;  %597 = vmatpush.msra.mxu0 %v524_v39 }
  0x98   :  { %1673 = vmatpush.msra.mxu3 %v524_v39 }
  0x99   :  { %598 = vmatpush.msra.mxu0 %v523_v9 }
  0x9a   :  { %1674 = vmatpush.msra.mxu3 %v523_v9 }
  0x9e   :  { %321 = vrot.lane.b32.xlu0 %v291_v42, %s1854_s2  ;;  %385 = vrot.lane.b32.xlu1 %v2218_v53, %s1853_s1 }
  0x9f   :  { %433 = vrot.lane.b32.xlu2 %v290_v60, %s1855_s21 }
  0xa6   :  { %323 = vrot.lane.b32.xlu0 %v290_v60, %s1854_s2  ;;  %387 = vrot.lane.b32.xlu1 %v2230_v56, %s1853_s1 }
  0xa7   :  { %435 = vrot.lane.b32.xlu2 %v289_v1, %s1855_s21 }
  0xae   :  { %325 = vrot.lane.b32.xlu0 %v289_v1, %s1854_s2  ;;  %389 = vrot.lane.b32.xlu1 %v2243_v6, %s1853_s1 }
  0xaf   :  { %437 = vrot.lane.b32.xlu2 %v288_v12, %s1855_s21 }
  0xb6   :  { %327 = vrot.lane.b32.xlu0 %v288_v12, %s1854_s2  ;;  %391 = vrot.lane.b32.xlu1 %v2256_v3, %s1853_s1 }
  0xb7   :  { %439 = vrot.lane.b32.xlu2 %v287_v13, %s1855_s21 }
  0xbe   :  { %329 = vrot.lane.b32.xlu0 %v287_v13, %s1854_s2  ;;  %393 = vrot.lane.b32.xlu1 %v2269_v14, %s1853_s1 }
  0xbf   :  { %441 = vrot.lane.b32.xlu2 %v286_v27, %s1855_s21 }
  0xc6   :  { %331 = vrot.lane.b32.xlu0 %v286_v27, %s1854_s2  ;;  %395 = vrot.lane.b32.xlu1 %v2282_v20, %s1853_s1 }
  0xc7   :  { %443 = vrot.lane.b32.xlu2 %v285_v37, %s1855_s21 }
  0xce   :  { %333 = vrot.lane.b32.xlu0 %v285_v37, %s1854_s2  ;;  %397 = vrot.lane.b32.xlu1 %v2295_v19, %s1853_s1 }
  0xcf   :  { %445 = vrot.lane.b32.xlu2 %v284_v48, %s1855_s21 }
  0xd6   :  { %339 = vrot.lane.b32.xlu0 %v282_v49, %s1854_s2  ;;  %403 = vrot.lane.b32.xlu1 %v2325_v32, %s1853_s1 }
  0xd7   :  { %451 = vrot.lane.b32.xlu2 %v281_v26, %s1855_s21 }
  0xd9   :  { %v380_v50 = vpop.permute.xlu2 %379 }
  0xde   :  { %335 = vrot.lane.b32.xlu0 %v284_v48, %s1854_s2  ;;  %399 = vrot.lane.b32.xlu1 %v2312_v4, %s1853_s1 }
  0xdf   :  { %447 = vrot.lane.b32.xlu2 %v283_v52, %s1855_s21 }
  0xe1   :  { %v428_v54 = vpop.permute.xlu2 %427 }
  0xe6   :  { %341 = vrot.lane.b32.xlu0 %v281_v26, %s1854_s2  ;;  %405 = vrot.lane.b32.xlu1 %v2333_v15, %s1853_s1 }
  0xe7   :  { %453 = vrot.lane.b32.xlu2 %v296_v55, %s1855_s21 }
  0xe9   :  { %v430_v42 = vpop.permute.xlu2 %429 }
  0xee   :  { %337 = vrot.lane.b32.xlu0 %v283_v52, %s1854_s2  ;;  %401 = vrot.lane.b32.xlu1 %v2322_v43, %s1853_s1 }
  0xef   :  { %449 = vrot.lane.b32.xlu2 %v282_v49, %s1855_s21 }
  0xf0   :  { %v382_v57 = vpop.permute.xlu1 %381  ;;  %v378_v2 = vpop.permute.xlu0 %377 }
  0xf1   :  { %v432_v59 = vpop.permute.xlu2 %431 }
  0xf6   :  { %343 = vrot.lane.b32.xlu0 %v296_v55, %s1854_s2  ;;  %407 = vrot.lane.b32.xlu1 %v2172_v38, %s1853_s1 }
  0xf7   :  { %455 = vrot.lane.b32.xlu2 %v2198_v47, %s1855_s21  ;;  %s1859_s21 = smov 96  }
  0xf8   :  { %v384_v28 = vpop.permute.xlu1 %383  ;;  %v314_v60 = vpop.permute.xlu0 %313 }
  0xf9   :  { %v434_v16 = vpop.permute.xlu2 %433  ;;  %v473_v8 = vsel %vm79_vm0, %v2172_v38, %v314_v60 }
  0xfa   :  { %v490_v18 = vsel %vm489_vm7, %v473_v8, %v378_v2 }
 0x100   :  { %v426_v0 = vpop.permute.xlu1 %425  ;;  %v318_v1 = vpop.permute.xlu0 %317 }
 0x101   :  { %v507_v7 = vsel %vm506_vm8, %v490_v18, %v426_v0  ;;  %v436_v11 = vpop.permute.xlu2 %435  ;;  %v475_v17 = vsel %vm79_vm0, %v2177_v40, %v318_v1 }
 0x102   :  { %1636 = vmatmul.msk.f32.vlgmr.msra.gmra.mxu0 %vm530_vm9, %v507_v7  ;;  %v492_v58 = vsel %vm489_vm7, %v475_v17, %v382_v57 }
 0x103   :  { %v509_v27 = vsel %vm506_vm8, %v492_v58, %v430_v42 }
 0x108   :  { %v316_v12 = vpop.permute.xlu1 %315  ;;  %v320_v47 = vpop.permute.xlu0 %319 }
 0x109   :  { %v474_v24 = vsel %vm79_vm0, %v2169_v61, %v316_v12  ;;  %v438_v13 = vpop.permute.xlu2 %437  ;;  %v476_v61 = vsel %vm79_vm0, %v2166_v62, %v320_v47 }
 0x10a   :  { %v491_v10 = vsel %vm489_vm7, %v474_v24, %v380_v50  ;;  %v493_v22 = vsel %vm489_vm7, %v476_v61, %v384_v28 }
 0x10b   :  { %v508_v38 = vsel %vm506_vm8, %v491_v10, %v428_v54  ;;  %v510_v34 = vsel %vm506_vm8, %v493_v22, %v432_v59 }
 0x10c   :  { %1637 = vmatmul.msk.f32.gmra.mxu0 %vm530_vm9, %v508_v38 }
 0x110   :  { %v322_v29 = vpop.permute.xlu0 %321  ;;  %v386_v21 = vpop.permute.xlu1 %385 }
 0x111   :  { %v440_v33 = vpop.permute.xlu2 %439  ;;  %v477_v40 = vsel %vm79_vm0, %v2190_v44, %v322_v29 }
 0x112   :  { %v494_v37 = vsel %vm489_vm7, %v477_v40, %v386_v21 }
 0x113   :  { %v511_v45 = vsel %vm506_vm8, %v494_v37, %v434_v16 }
 0x114   :  { %1638 = vmatmul.msk.f32.gmra.mxu0 %vm530_vm9, %v509_v27 }
 0x118   :  { %v324_v30 = vpop.permute.xlu0 %323  ;;  %v388_v31 = vpop.permute.xlu1 %387 }
 0x119   :  { %v442_v41 = vpop.permute.xlu2 %441  ;;  %v478_v62 = vsel %vm79_vm0, %v2218_v53, %v324_v30 }
 0x11a   :  { %v495_v5 = vsel %vm489_vm7, %v478_v62, %v388_v31 }
 0x11b   :  { %v512_v23 = vsel %vm506_vm8, %v495_v5, %v436_v11 }
 0x11c   :  { %1639 = vmatmul.msk.f32.gmra.mxu0 %vm530_vm9, %v510_v34 }
 0x120   :  { %v326_v36 = vpop.permute.xlu0 %325  ;;  %v390_v25 = vpop.permute.xlu1 %389 }
 0x121   :  { %v444_v35 = vpop.permute.xlu2 %443  ;;  %v479_v44 = vsel %vm79_vm0, %v2230_v56, %v326_v36 }
 0x122   :  { %v496_v49 = vsel %vm489_vm7, %v479_v44, %v390_v25 }
 0x123   :  { %v513_v51 = vsel %vm506_vm8, %v496_v49, %v438_v13 }
 0x124   :  { %1640 = vmatmul.msk.f32.gmra.mxu0 %vm530_vm9, %v511_v45 }
 0x128   :  { %v328_v48 = vpop.permute.xlu0 %327  ;;  %v392_v46 = vpop.permute.xlu1 %391 }
 0x129   :  { %v480_v53 = vsel %vm79_vm0, %v2243_v6, %v328_v48  ;;  %v446_v39 = vpop.permute.xlu2 %445 }
 0x12a   :  { %v497_v52 = vsel %vm489_vm7, %v480_v53, %v392_v46 }
 0x12b   :  { %v514_v55 = vsel %vm506_vm8, %v497_v52, %v440_v33 }
 0x12c   :  { %1641 = vmatmul.msk.f32.gmra.mxu0 %vm530_vm9, %v512_v23 }
 0x130   :  { %v330_v26 = vpop.permute.xlu0 %329  ;;  %v394_v50 = vpop.permute.xlu1 %393 }
 0x131   :  { %v481_v56 = vsel %vm79_vm0, %v2256_v3, %v330_v26  ;;  %v452_v42 = vpop.permute.xlu2 %451 }
 0x132   :  { %v498_v57 = vsel %vm489_vm7, %v481_v56, %v394_v50 }
 0x133   :  { %v515_v28 = vsel %vm506_vm8, %v498_v57, %v442_v41 }
 0x134   :  { %1642 = vmatmul.msk.f32.gmra.mxu0 %vm530_vm9, %v513_v51 }
 0x138   :  { %v332_v9 = vpop.permute.xlu0 %331  ;;  %v396_v54 = vpop.permute.xlu1 %395 }
 0x139   :  { %v482_v6 = vsel %vm79_vm0, %v2269_v14, %v332_v9  ;;  %v448_v3 = vpop.permute.xlu2 %447 }
 0x13a   :  { %v499_v60 = vsel %vm489_vm7, %v482_v6, %v396_v54 }
 0x13b   :  { %v516_v18 = vsel %vm506_vm8, %v499_v60, %v444_v35 }
 0x13c   :  { %1643 = vmatmul.msk.f32.gmra.mxu0 %vm530_vm9, %v514_v55 }
 0x140   :  { %v334_v2 = vpop.permute.xlu0 %333  ;;  %v398_v59 = vpop.permute.xlu1 %397 }
 0x141   :  { %v483_v14 = vsel %vm79_vm0, %v2282_v20, %v334_v2  ;;  %v454_v24 = vpop.permute.xlu2 %453 }
 0x142   :  { %v500_v11 = vsel %vm489_vm7, %v483_v14, %v398_v59 }
 0x144   :  { %1644 = vmatmul.msk.f32.gmra.mxu0 %vm530_vm9, %v515_v28 }
 0x148   :  { %v340_v16 = vpop.permute.xlu0 %339  ;;  %v404_v8 = vpop.permute.xlu1 %403 }
 0x149   :  { %v486_v0 = vsel %vm79_vm0, %v2322_v43, %v340_v16  ;;  %v517_v43 = vsel %vm506_vm8, %v500_v11, %v446_v39  ;;  %v450_v27 = vpop.permute.xlu2 %449 }
 0x14a   :  { %v503_v1 = vsel %vm489_vm7, %v486_v0, %v404_v8 }
 0x14b   :  { %v520_v7 = vsel %vm506_vm8, %v503_v1, %v452_v42 }
 0x14c   :  { %1645 = vmatmul.msk.f32.gmra.mxu0 %vm530_vm9, %v516_v18  ;;  %1649 = vmatmul.msk.f32.vlgmr.msra.gmra.mxu3 %vm530_vm9, %v520_v7 }
 0x150   :  { %v336_v12 = vpop.permute.xlu0 %335  ;;  %v400_v47 = vpop.permute.xlu1 %399 }
 0x151   :  { %v484_v10 = vsel %vm79_vm0, %v2295_v19, %v336_v12  ;;  %v456_v31 = vpop.permute.xlu2 %455 }
 0x152   :  { %v501_v38 = vsel %vm489_vm7, %v484_v10, %v400_v47 }
 0x153   :  { %v518_v21 = vsel %vm506_vm8, %v501_v38, %v448_v3 }
 0x154   :  { %1646 = vmatmul.msk.f32.gmra.mxu0 %vm530_vm9, %v517_v43 }
 0x158   :  { %v342_v17 = vpop.permute.xlu0 %341  ;;  %v406_v13 = vpop.permute.xlu1 %405 }
 0x159   :  { %v487_v29 = vsel %vm79_vm0, %v2325_v32, %v342_v17 }
 0x15a   :  { %v504_v20 = vsel %vm489_vm7, %v487_v29, %v406_v13 }
 0x15b   :  { %v521_v58 = vsel %vm506_vm8, %v504_v20, %v454_v24 }
 0x15c   :  { %1647 = vmatmul.msk.f32.gmra.mxu0 %vm530_vm9, %v518_v21  ;;  %1650 = vmatmul.msk.f32.gmra.mxu3 %vm530_vm9, %v521_v58 }
 0x160   :  { %v338_v61 = vpop.permute.xlu0 %337  ;;  %v402_v19 = vpop.permute.xlu1 %401 }
 0x161   :  { %v485_v33 = vsel %vm79_vm0, %v2312_v4, %v338_v61  ;;  %v2462_v4 = vld [vmem:[%s3253_s4] ss:$0 sm:$0xff]  ;;  %s1856_s4 = smov 30  }
 0x162   :  { %v502_v30 = vsel %vm489_vm7, %v485_v33, %v402_v19 }
 0x163   :  { %v519_v32 = vsel %vm506_vm8, %v502_v30, %v450_v27 }
 0x164   :  { %1648 = vmatmul.msk.f32.gmra.mxu0 %vm530_vm9, %v519_v32 }
 0x168   :  { %v344_v22 = vpop.permute.xlu0 %343  ;;  %v408_v34 = vpop.permute.xlu1 %407 }
 0x169   :  { %v488_v40 = vsel %vm79_vm0, %v2333_v15, %v344_v22 }
 0x16a   :  { %v505_v37 = vsel %vm489_vm7, %v488_v40, %v408_v34 }
 0x16b   :  { %v522_v36 = vsel %vm506_vm8, %v505_v37, %v456_v31 }
 0x16c   :  { %1651 = vmatmul.msk.f32.gmra.mxu3 %vm530_vm9, %v522_v36 }
 0x17f   :  { %v600_v25 = vpop.f32.mrf.mxu0 }
 0x180   :  { %v601_v41 = vadd.f32 %v2462_v4, %v600_v25 }
 0x182   :  { %v2465_v62 = vmax.f32 %v601_v41, 0.0 }
 0x184   :  { %v664_v48 = vrot.slane %v2465_v62, 1 }
 0x189   :  { %v603_v45 = vpop.f32.mrf.mxu0 }
 0x18a   :  { %v604_v5 = vadd.f32 %v2462_v4, %v603_v45 }
 0x18c   :  { %v2468_v15 = vmax.f32 %v604_v5, 0.0 }
 0x18e   :  { %v665_v46 = vrot.slane %v2468_v15, 1 }
 0x190   :  { %v2476_v23 = vsel %vm280_vm5, %v664_v48, %v665_v46 }
 0x191   :  { %712 = vrot.lane.b32.xlu0 %v2476_v23, %s1853_s1  ;;  %v606_v35 = vpop.f32.mrf.mxu0 }
 0x192   :  { %v607_v44 = vadd.f32 %v2462_v4, %v606_v35 }
 0x194   :  { %v2481_v49 = vmax.f32 %v607_v44, 0.0 }
 0x196   :  { %v666_v26 = vrot.slane %v2481_v49, 1 }
 0x198   :  { %v2486_v50 = vsel %vm280_vm5, %v665_v46, %v666_v26 }
 0x199   :  { %714 = vrot.lane.b32.xlu0 %v2486_v50, %s1853_s1  ;;  %v609_v51 = vpop.f32.mrf.mxu0 }
 0x19a   :  { %v610_v53 = vadd.f32 %v2462_v4, %v609_v51 }
 0x19c   :  { %v2491_v39 = vmax.f32 %v610_v53, 0.0 }
 0x19e   :  { %v667_v52 = vrot.slane %v2491_v39, 1 }
 0x1a0   :  { %v2496_v9 = vsel %vm280_vm5, %v666_v26, %v667_v52 }
 0x1a1   :  { %716 = vrot.lane.b32.xlu0 %v2496_v9, %s1853_s1  ;;  %v612_v54 = vpop.f32.mrf.mxu0 }
 0x1a2   :  { %v613_v55 = vadd.f32 %v2462_v4, %v612_v54 }
 0x1a4   :  { %v2501_v56 = vmax.f32 %v613_v55, 0.0 }
 0x1a6   :  { %v668_v42 = vrot.slane %v2501_v56, 1 }
 0x1a8   :  { %v2506_v57 = vsel %vm280_vm5, %v667_v52, %v668_v42 }
 0x1a9   :  { %718 = vrot.lane.b32.xlu0 %v2506_v57, %s1853_s1  ;;  %v615_v2 = vpop.f32.mrf.mxu0 }
 0x1aa   :  { %v616_v59 = vadd.f32 %v2462_v4, %v615_v2 }
 0x1ac   :  { %v2511_v28 = vmax.f32 %v616_v59, 0.0  ;;  %v923_v59 = vld [vmem:[%s3254_s5 + $0x10] sm:$0xff] }
 0x1ae   :  { %v669_v6 = vrot.slane %v2511_v28, 1 }
 0x1b0   :  { %v2516_v60 = vsel %vm280_vm5, %v668_v42, %v669_v6 }
 0x1b1   :  { %720 = vrot.lane.b32.xlu0 %v2516_v60, %s1853_s1  ;;  %v618_v16 = vpop.f32.mrf.mxu0 }
 0x1b2   :  { %v619_v8 = vadd.f32 %v2462_v4, %v618_v16  ;;  %v921_v16 = vld [vmem:[%s3254_s5] sm:$0xff] }
 0x1b4   :  { %v2521_v0 = vmax.f32 %v619_v8, 0.0 }
 0x1b6   :  { %v670_v3 = vrot.slane %v2521_v0, 1 }
 0x1b8   :  { %v2526_v1 = vsel %vm280_vm5, %v669_v6, %v670_v3 }
 0x1b9   :  { %722 = vrot.lane.b32.xlu0 %v2526_v1, %s1853_s1  ;;  %v621_v18 = vpop.f32.mrf.mxu0 }
 0x1ba   :  { %v622_v7 = vadd.f32 %v2462_v4, %v621_v18 }
 0x1bc   :  { %v2531_v14 = vmax.f32 %v622_v7, 0.0 }
 0x1be   :  { %v671_v11 = vrot.slane %v2531_v14, 1 }
 0x1c0   :  { %v2536_v12 = vsel %vm280_vm5, %v670_v3, %v671_v11 }
 0x1c1   :  { %724 = vrot.lane.b32.xlu0 %v2536_v12, %s1853_s1  ;;  %v624_v47 = vpop.f32.mrf.mxu0 }
 0x1c2   :  { %v625_v43 = vadd.f32 %v2462_v4, %v624_v47 }
 0x1c4   :  { %v2541_v24 = vmax.f32 %v625_v43, 0.0 }
 0x1c6   :  { %v672_v10 = vrot.slane %v2541_v24, 1 }
 0x1c8   :  { %v687_v38 = vsel %vm280_vm5, %v671_v11, %v672_v10 }
 0x1c9   :  { %836 = vrot.lane.b32.xlu0 %v687_v38, %s1856_s4  ;;  %v627_v17 = vpop.f32.mrf.mxu0 }
 0x1ca   :  { %v628_v13 = vadd.f32 %v2462_v4, %v627_v17 }
 0x1cc   :  { %v2548_v20 = vmax.f32 %v628_v13, 0.0 }
 0x1ce   :  { %v673_v27 = vrot.slane %v2548_v20, 1 }
 0x1cf   :  { %v639_v29 = vpop.f32.mrf.mxu3 }
 0x1d0   :  { %v640_v21 = vadd.f32 %v2462_v4, %v639_v29  ;;  %v686_v61 = vsel %vm280_vm5, %v672_v10, %v673_v27 }
 0x1d1   :  { %726 = vrot.lane.b32.xlu0 %v687_v38, %s1853_s1  ;;  %v630_v19 = vpop.f32.mrf.mxu0 }
 0x1d2   :  { %v2552_v58 = vmax.f32 %v640_v21, 0.0  ;;  %v631_v33 = vadd.f32 %v2462_v4, %v630_v19 }
 0x1d4   :  { %800 = vrot.lane.b32.xlu1 %v2552_v58, %s1857_s28  ;;  %v2563_v32 = vmax.f32 %v631_v33, 0.0  ;;  %v677_v34 = vrot.slane %v2552_v58, 1 }
 0x1d6   :  { %v674_v40 = vrot.slane %v2563_v32, 1 }
 0x1d8   :  { %v685_v25 = vsel %vm280_vm5, %v673_v27, %v674_v40 }
 0x1d9   :  { %838 = vrot.lane.b32.xlu0 %v686_v61, %s1856_s4  ;;  %v633_v41 = vpop.f32.mrf.mxu0 }
 0x1da   :  { %v634_v45 = vadd.f32 %v2462_v4, %v633_v41 }
 0x1dc   :  { %776 = vrot.lane.b32.xlu1 %v2468_v15, %s1857_s28  ;;  %v2586_v46 = vmax.f32 %v634_v45, 0.0 }
 0x1de   :  { %v675_v26 = vrot.slane %v2586_v46, 1 }
 0x1df   :  { %v642_v30 = vpop.f32.mrf.mxu3 }
 0x1e0   :  { %v643_v31 = vadd.f32 %v2462_v4, %v642_v30  ;;  %v684_v51 = vsel %vm280_vm5, %v674_v40, %v675_v26 }
 0x1e1   :  { %728 = vrot.lane.b32.xlu0 %v686_v61, %s1853_s1  ;;  %v636_v53 = vpop.f32.mrf.mxu0 }
 0x1e2   :  { %v2567_v22 = vmax.f32 %v643_v31, 0.0  ;;  %v637_v54 = vadd.f32 %v2462_v4, %v636_v53 }
 0x1e4   :  { %v678_v37 = vrot.slane %v2567_v22, 1  ;;  %802 = vrot.lane.b32.xlu1 %v2567_v22, %s1857_s28  ;;  %v2607_v42 = vmax.f32 %v637_v54, 0.0 }
 0x1e6   :  { %v681_v36 = vsel %vm280_vm5, %v677_v34, %v678_v37 }
 0x1e7   :  { %848 = vrot.lane.b32.xlu2 %v681_v36, %s1856_s4 }
 0x1e9   :  { %840 = vrot.lane.b32.xlu0 %v685_v25, %s1856_s4 }
 0x1ec   :  { %778 = vrot.lane.b32.xlu1 %v2481_v49, %s1857_s28 }
 0x1ef   :  { %738 = vrot.lane.b32.xlu2 %v681_v36, %s1853_s1  ;;  %v645_v5 = vpop.f32.mrf.mxu3 }
 0x1f0   :  { %v646_v35 = vadd.f32 %v2462_v4, %v645_v5 }
 0x1f1   :  { %730 = vrot.lane.b32.xlu0 %v685_v25, %s1853_s1 }
 0x1f2   :  { %v2590_v44 = vmax.f32 %v646_v35, 0.0 }
 0x1f4   :  { %804 = vrot.lane.b32.xlu1 %v2590_v44, %s1857_s28  ;;  %v679_v52 = vrot.slane %v2590_v44, 1 }
 0x1f6   :  { %v680_v55 = vsel %vm280_vm5, %v678_v37, %v679_v52 }
 0x1f7   :  { %824 = vrot.lane.b32.xlu2 %v2486_v50, %s1856_s4  ;;  %v676_v50 = vrot.slane %v2607_v42, 1 }
 0x1f9   :  { %842 = vrot.lane.b32.xlu0 %v684_v51, %s1856_s4  ;;  %v683_v4 = vsel %vm280_vm5, %v675_v26, %v676_v50  ;;  %v682_v8 = vsel %vm280_vm5, %v676_v50, %v677_v34 }
 0x1fc   :  { %780 = vrot.lane.b32.xlu1 %v2491_v39, %s1857_s28 }
 0x1ff   :  { %850 = vrot.lane.b32.xlu2 %v680_v55, %s1856_s4 }
 0x201   :  { %732 = vrot.lane.b32.xlu0 %v684_v51, %s1853_s1 }
 0x203   :  { %v713_v2 = vpop.permute.xlu0 %712 }
 0x204   :  { %782 = vrot.lane.b32.xlu1 %v2501_v56, %s1857_s28 }
 0x207   :  { %740 = vrot.lane.b32.xlu2 %v680_v55, %s1853_s1 }
 0x209   :  { %734 = vrot.lane.b32.xlu0 %v683_v4, %s1853_s1 }
 0x20b   :  { %v715_v6 = vpop.permute.xlu0 %714 }
 0x20c   :  { %784 = vrot.lane.b32.xlu1 %v2511_v28, %s1857_s28  ;;  %v873_v31 = vsel %vm489_vm7, %v2468_v15, %v715_v6 }
 0x20f   :  { %826 = vrot.lane.b32.xlu2 %v2496_v9, %s1856_s4  ;;  %v925_v9 = vld [vmem:[%s3254_s5 + $0x20] sm:$0xff] }
 0x210   :  { %990 = vmatpush.msra.mxu1 %v925_v9  ;;  %1675 = vmatpush.msrb.mxu3 %v925_v9 }
 0x213   :  { %v717_v3 = vpop.permute.xlu0 %716 }
 0x214   :  { %786 = vrot.lane.b32.xlu1 %v2521_v0, %s1857_s28  ;;  %v874_v25 = vsel %vm489_vm7, %v2481_v49, %v717_v3 }
 0x217   :  { %828 = vrot.lane.b32.xlu2 %v2506_v57, %s1856_s4  ;;  %v924_v57 = vld [vmem:[%s3254_s5 + $0x18] sm:$0xff] }
 0x218   :  { %991 = vmatpush.msra.mxu1 %v924_v57  ;;  %1676 = vmatpush.msrb.mxu3 %v924_v57 }
 0x21a   :  { %992 = vmatpush.msra.mxu1 %v923_v59  ;;  %1677 = vmatpush.msrb.mxu3 %v923_v59 }
 0x21b   :  { %v719_v7 = vpop.permute.xlu0 %718 }
 0x21c   :  { %788 = vrot.lane.b32.xlu1 %v2531_v14, %s1857_s28  ;;  %v875_v26 = vsel %vm489_vm7, %v2491_v39, %v719_v7 }
 0x21f   :  { %830 = vrot.lane.b32.xlu2 %v2516_v60, %s1856_s4  ;;  %v922_v60 = vld [vmem:[%s3254_s5 + $0x8] sm:$0xff] }
 0x220   :  { %993 = vmatpush.msra.mxu1 %v922_v60  ;;  %1678 = vmatpush.msrb.mxu3 %v922_v60 }
 0x222   :  { %994 = vmatpush.msra.mxu1 %v921_v16  ;;  %1679 = vmatpush.msrb.mxu3 %v921_v16 }
 0x223   :  { %v721_v47 = vpop.permute.xlu0 %720 }
 0x224   :  { %790 = vrot.lane.b32.xlu1 %v2541_v24, %s1857_s28  ;;  %v876_v55 = vsel %vm489_vm7, %v2501_v56, %v721_v47 }
 0x227   :  { %832 = vrot.lane.b32.xlu2 %v2526_v1, %s1856_s4  ;;  %v695_v1 = vsel %vm280_vm5, %v679_v52, %v664_v48  ;;  %v872_v48 = vsel %vm489_vm7, %v2465_v62, %v713_v2 }
 0x22b   :  { %v723_v21 = vpop.permute.xlu0 %722 }
 0x22c   :  { %792 = vrot.lane.b32.xlu1 %v2548_v20, %s1857_s28  ;;  %v877_v9 = vsel %vm489_vm7, %v2511_v28, %v723_v21 }
 0x22f   :  { %834 = vrot.lane.b32.xlu2 %v2536_v12, %s1856_s4 }
 0x233   :  { %v725_v19 = vpop.permute.xlu0 %724 }
 0x234   :  { %794 = vrot.lane.b32.xlu1 %v2563_v32, %s1857_s28  ;;  %v878_v56 = vsel %vm489_vm7, %v2521_v0, %v725_v19 }
 0x237   :  { %736 = vrot.lane.b32.xlu2 %v682_v8, %s1853_s1 }
 0x23b   :  { %v837_v37 = vpop.permute.xlu0 %836 }
 0x23c   :  { %806 = vrot.lane.b32.xlu1 %v2465_v62, %s1857_s28 }
 0x23f   :  { %852 = vrot.lane.b32.xlu2 %v695_v1, %s1856_s4 }
 0x241   :  { %v2666_v18 = vpop.permute.xlu2 %848 }
 0x243   :  { %v727_v15 = vpop.permute.xlu0 %726 }
 0x244   :  { %796 = vrot.lane.b32.xlu1 %v2586_v46, %s1857_s28  ;;  %v879_v0 = vsel %vm489_vm7, %v2531_v14, %v727_v15 }
 0x246   :  { %v2670_v11 = vpop.permute.xlu1 %800 }
 0x247   :  { %742 = vrot.lane.b32.xlu2 %v695_v1, %s1853_s1 }
 0x249   :  { %v739_v12 = vpop.permute.xlu2 %738 }
 0x24a   :  { %v885_v13 = vsel %vm489_vm7, %v2552_v58, %v739_v12 }
 0x24b   :  { %v839_v54 = vpop.permute.xlu0 %838 }
 0x24c   :  { %798 = vrot.lane.b32.xlu1 %v2607_v42, %s1857_s28 }
 0x24e   :  { %v777_v43 = vpop.permute.xlu1 %776 }
 0x24f   :  { %854 = vrot.lane.b32.xlu2 %v2476_v23, %s1856_s4  ;;  %v888_v10 = vsel %vm530_vm9, %v872_v48, %v777_v43 }
 0x251   :  { %v825_v38 = vpop.permute.xlu2 %824 }
 0x252   :  { %v905_v17 = vsel %vm904_vm10, %v888_v10, %v825_v38 }
 0x253   :  { %1652 = vmatmul.msk.f32.vlgmr.msra.gmra.mxu1 %vm930_vm11, %v905_v17  ;;  %v729_v57 = vpop.permute.xlu0 %728 }
 0x256   :  { %v803_v29 = vpop.permute.xlu1 %802 }
 0x257   :  { %v901_v27 = vsel %vm530_vm9, %v885_v13, %v803_v29  ;;  %844 = vrot.lane.b32.xlu2 %v683_v4, %s1856_s4 }
 0x259   :  { %v851_v23 = vpop.permute.xlu2 %850 }
 0x25a   :  { %v918_v62 = vsel %vm904_vm10, %v901_v27, %v851_v23 }
 0x25b   :  { %v841_v7 = vpop.permute.xlu0 %840 }
 0x25e   :  { %v779_v61 = vpop.permute.xlu1 %778 }
 0x25f   :  { %846 = vrot.lane.b32.xlu2 %v682_v8, %s1856_s4  ;;  %v889_v58 = vsel %vm530_vm9, %v873_v31, %v779_v61 }
 0x261   :  { %v741_v33 = vpop.permute.xlu2 %740 }
 0x262   :  { %v886_v14 = vsel %vm489_vm7, %v2567_v22, %v741_v33 }
 0x263   :  { %v731_v38 = vpop.permute.xlu0 %730 }
 0x266   :  { %v805_v30 = vpop.permute.xlu1 %804 }
 0x267   :  { %v902_v21 = vsel %vm530_vm9, %v886_v14, %v805_v30 }
 0x269   :  { %v827_v34 = vpop.permute.xlu2 %826 }
 0x26a   :  { %v906_v40 = vsel %vm904_vm10, %v889_v58, %v827_v34 }
 0x26b   :  { %1653 = vmatmul.msk.f32.gmra.mxu1 %vm930_vm11, %v906_v40 }
 0x26e   :  { %v781_v36 = vpop.permute.xlu1 %780 }
 0x26f   :  { %v890_v41 = vsel %vm530_vm9, %v874_v25, %v781_v36 }
 0x271   :  { %v829_v45 = vpop.permute.xlu2 %828 }
 0x272   :  { %v907_v5 = vsel %vm904_vm10, %v890_v41, %v829_v45 }
 0x273   :  { %1654 = vmatmul.msk.f32.gmra.mxu1 %vm930_vm11, %v907_v5 }
 0x276   :  { %v783_v35 = vpop.permute.xlu1 %782 }
 0x277   :  { %v891_v51 = vsel %vm530_vm9, %v875_v26, %v783_v35 }
 0x279   :  { %v831_v53 = vpop.permute.xlu2 %830 }
 0x27a   :  { %v908_v52 = vsel %vm904_vm10, %v891_v51, %v831_v53  ;;  %v2764_v51 = vld [vmem:[%s3255_s6] ss:$0 sm:$0xff]  ;;  %s1858_s6 = smov 64  }
 0x27b   :  { %1655 = vmatmul.msk.f32.gmra.mxu1 %vm930_vm11, %v908_v52 }
 0x27e   :  { %v785_v49 = vpop.permute.xlu1 %784 }
 0x27f   :  { %v892_v50 = vsel %vm530_vm9, %v876_v55, %v785_v49 }
 0x281   :  { %v833_v4 = vpop.permute.xlu2 %832 }
 0x282   :  { %v909_v2 = vsel %vm904_vm10, %v892_v50, %v833_v4 }
 0x283   :  { %1656 = vmatmul.msk.f32.gmra.mxu1 %vm930_vm11, %v909_v2 }
 0x286   :  { %v787_v39 = vpop.permute.xlu1 %786 }
 0x287   :  { %v893_v59 = vsel %vm530_vm9, %v877_v9, %v787_v39 }
 0x289   :  { %v835_v6 = vpop.permute.xlu2 %834 }
 0x28a   :  { %v910_v60 = vsel %vm904_vm10, %v893_v59, %v835_v6 }
 0x28b   :  { %1657 = vmatmul.msk.f32.gmra.mxu1 %vm930_vm11, %v910_v60 }
 0x28e   :  { %v789_v16 = vpop.permute.xlu1 %788 }
 0x28f   :  { %v894_v8 = vsel %vm530_vm9, %v878_v56, %v789_v16 }
 0x290   :  { %v911_v28 = vsel %vm904_vm10, %v894_v8, %v837_v37 }
 0x291   :  { %v737_v3 = vpop.permute.xlu2 %736 }
 0x292   :  { %v884_v1 = vsel %vm489_vm7, %v2607_v42, %v737_v3 }
 0x293   :  { %v900_v12 = vsel %vm530_vm9, %v884_v1, %v2670_v11  ;;  %1658 = vmatmul.msk.f32.gmra.mxu1 %vm930_vm11, %v911_v28  ;;  %v880_v11 = vsel %vm489_vm7, %v2541_v24, %v729_v57  ;;  %v881_v24 = vsel %vm489_vm7, %v2548_v20, %v731_v38 }
 0x294   :  { %v917_v47 = vsel %vm904_vm10, %v900_v12, %v2666_v18 }
 0x295   :  { %1664 = vmatmul.msk.f32.vlgmr.msrb.gmra.mxu3 %vm930_vm11, %v917_v47 }
 0x296   :  { %v791_v43 = vpop.permute.xlu1 %790 }
 0x297   :  { %v895_v48 = vsel %vm530_vm9, %v879_v0, %v791_v43 }
 0x298   :  { %v912_v10 = vsel %vm904_vm10, %v895_v48, %v839_v54 }
 0x299   :  { %v853_v42 = vpop.permute.xlu2 %852 }
 0x29a   :  { %v919_v27 = vsel %vm904_vm10, %v902_v21, %v853_v42 }
 0x29b   :  { %1659 = vmatmul.msk.f32.gmra.mxu1 %vm930_vm11, %v912_v10 }
 0x29d   :  { %1665 = vmatmul.msk.f32.gmra.mxu3 %vm930_vm11, %v918_v62  ;;  %v843_v62 = vpop.permute.xlu0 %842 }
 0x29e   :  { %v793_v18 = vpop.permute.xlu1 %792 }
 0x29f   :  { %v896_v17 = vsel %vm530_vm9, %v880_v11, %v793_v18 }
 0x2a0   :  { %v913_v29 = vsel %vm904_vm10, %v896_v17, %v841_v7 }
 0x2a1   :  { %v743_v13 = vpop.permute.xlu2 %742 }
 0x2a2   :  { %v887_v33 = vsel %vm489_vm7, %v2590_v44, %v743_v13 }
 0x2a3   :  { %1660 = vmatmul.msk.f32.gmra.mxu1 %vm930_vm11, %v913_v29 }
 0x2a5   :  { %1666 = vmatmul.msk.f32.gmra.mxu3 %vm930_vm11, %v919_v27  ;;  %v733_v34 = vpop.permute.xlu0 %732 }
 0x2a6   :  { %v795_v23 = vpop.permute.xlu1 %794  ;;  %v882_v40 = vsel %vm489_vm7, %v2563_v32, %v733_v34 }
 0x2a7   :  { %v897_v61 = vsel %vm530_vm9, %v881_v24, %v795_v23 }
 0x2a8   :  { %v914_v19 = vsel %vm904_vm10, %v897_v61, %v843_v62 }
 0x2a9   :  { %v855_v22 = vpop.permute.xlu2 %854 }
 0x2ab   :  { %1661 = vmatmul.msk.f32.gmra.mxu1 %vm930_vm11, %v914_v19 }
 0x2ad   :  { %v735_v44 = vpop.permute.xlu0 %734 }
 0x2ae   :  { %v807_v30 = vpop.permute.xlu1 %806  ;;  %v883_v41 = vsel %vm489_vm7, %v2586_v46, %v735_v44 }
 0x2af   :  { %v903_v31 = vsel %vm530_vm9, %v887_v33, %v807_v30 }
 0x2b0   :  { %v920_v58 = vsel %vm904_vm10, %v903_v31, %v855_v22 }
 0x2b1   :  { %1667 = vmatmul.msk.f32.gmra.mxu3 %vm930_vm11, %v920_v58  ;;  %v845_v20 = vpop.permute.xlu2 %844 }
 0x2b6   :  { %v797_v37 = vpop.permute.xlu1 %796 }
 0x2b7   :  { %v898_v36 = vsel %vm530_vm9, %v882_v40, %v797_v37 }
 0x2b8   :  { %v915_v25 = vsel %vm904_vm10, %v898_v36, %v845_v20 }
 0x2b9   :  { %1662 = vmatmul.msk.f32.gmra.mxu1 %vm930_vm11, %v915_v25  ;;  %v847_v5 = vpop.permute.xlu2 %846 }
 0x2be   :  { %v799_v45 = vpop.permute.xlu1 %798 }
 0x2bf   :  { %v899_v15 = vsel %vm530_vm9, %v883_v41, %v799_v45 }
 0x2c0   :  { %v916_v35 = vsel %vm904_vm10, %v899_v15, %v847_v5 }
 0x2c1   :  { %1663 = vmatmul.msk.f32.gmra.mxu1 %vm930_vm11, %v916_v35 }
 0x2d0   :  { %v996_v32 = vpop.f32.mrf.mxu1 }
 0x2d1   :  { %v997_v52 = vadd.f32 %v2764_v51, %v996_v32 }
 0x2d3   :  { %v2768_v54 = vmax.f32 %v997_v52, 0.0 }
 0x2d5   :  { %v1060_v2 = vrot.slane %v2768_v54, 1 }
 0x2e8   :  { %v999_v26 = vpop.f32.mrf.mxu1 }
 0x2e9   :  { %v1000_v53 = vadd.f32 %v2764_v51, %v999_v26 }
 0x2eb   :  { %v1045_v46 = vmax.f32 %v1000_v53, 0.0 }
 0x2ed   :  { %v1061_v50 = vrot.slane %v1045_v46, 1 }
 0x2ef   :  { %v2776_v9 = vsel %vm280_vm5, %v1060_v2, %v1061_v50 }
 0x2f0   :  { %v1002_v49 = vpop.f32.mrf.mxu1  ;;  %v1092_v60 = vmax.f32 %v2768_v54, %v2776_v9 }
 0x2f1   :  { %v1003_v55 = vadd.f32 %v2764_v51, %v1002_v49 }
 0x2f2   :  { %v1108_v3 = vmax.f32 %v1092_v60, %v1045_v46 }
 0x2f3   :  { %v1046_v4 = vmax.f32 %v1003_v55, 0.0 }
 0x2f5   :  { %v1062_v39 = vrot.slane %v1046_v4, 1 }
 0x2f7   :  { %v1089_v57 = vsel %vm280_vm5, %v1061_v50, %v1062_v39 }
 0x2f8   :  { %v1005_v59 = vpop.f32.mrf.mxu1  ;;  %v1093_v56 = vmax.f32 %v1045_v46, %v1089_v57  ;;  %v2785_v12 = vmax.f32 %v1108_v3, %v1089_v57 }
 0x2f9   :  { %v1006_v6 = vadd.f32 %v2764_v51, %v1005_v59 }
 0x2fa   :  { %v1109_v1 = vmax.f32 %v1093_v56, %v1046_v4  ;;  %v1140_v27 = vrot.slane %v2785_v12, 2 }
 0x2fb   :  { %v1047_v16 = vmax.f32 %v1006_v6, 0.0 }
 0x2fd   :  { %v1063_v8 = vrot.slane %v1047_v16, 1 }
 0x2ff   :  { %v1088_v28 = vsel %vm280_vm5, %v1062_v39, %v1063_v8 }
 0x300   :  { %v1008_v7 = vpop.f32.mrf.mxu1  ;;  %v2787_v47 = vmax.f32 %v1109_v1, %v1088_v28  ;;  %v1094_v43 = vmax.f32 %v1046_v4, %v1088_v28 }
 0x301   :  { %v1009_v0 = vadd.f32 %v2764_v51, %v1008_v7 }
 0x302   :  { %v1692_v48 = vpack.i.bf16 %v2785_v12, %v2787_v47  ;;  %v1110_v38 = vmax.f32 %v1094_v43, %v1047_v16  ;;  %v1141_v14 = vrot.slane %v2787_v47, 2 }
 0x303   :  { %v1048_v42 = vmax.f32 %v1009_v0, 0.0 }
 0x304   :  { %1693 = vrot.lane.b32.xlu1 %v1692_v48, %s1858_s6  ;;  %v1171_v61 = vsel %vm1156_vm12, %v1140_v27, %v1141_v14 }
 0x305   :  { %v1064_v10 = vrot.slane %v1048_v42, 1 }
 0x307   :  { %v1087_v11 = vsel %vm280_vm5, %v1063_v8, %v1064_v10 }
 0x308   :  { %v1095_v18 = vmax.f32 %v1047_v16, %v1087_v11  ;;  %v2795_v17 = vmax.f32 %v1110_v38, %v1087_v11  ;;  %v1011_v13 = vpop.f32.mrf.mxu1 }
 0x309   :  { %v1012_v29 = vadd.f32 %v2764_v51, %v1011_v13 }
 0x30a   :  { %v1111_v21 = vmax.f32 %v1095_v18, %v1048_v42  ;;  %v1142_v24 = vrot.slane %v2795_v17, 2 }
 0x30b   :  { %v2802_v23 = vmax.f32 %v1012_v29, 0.0 }
 0x30c   :  { %v1170_v62 = vsel %vm1156_vm12, %v1141_v14, %v1142_v24 }
 0x30d   :  { %v1065_v19 = vrot.slane %v2802_v23, 1  ;;  %v2813_v22 = vpack.i.bf16 %v1171_v61, %v1170_v62 }
 0x30f   :  { %v1086_v33 = vsel %vm280_vm5, %v1064_v10, %v1065_v19  ;;  %1698 = vrot.lane.b32.xlu2 %v2813_v22, %s1859_s21 }
 0x310   :  { %v1096_v30 = vmax.f32 %v1048_v42, %v1086_v33  ;;  %v2819_v31 = vmax.f32 %v1111_v21, %v1086_v33  ;;  %v1014_v58 = vpop.f32.mrf.mxu1 }
 0x311   :  { %v1015_v34 = vadd.f32 %v2764_v51, %v1014_v58 }
 0x312   :  { %v1112_v20 = vmax.f32 %v1096_v30, %v2802_v23 }
 0x313   :  { %v2823_v40 = vmax.f32 %v1015_v34, 0.0 }
 0x315   :  { %v1066_v37 = vrot.slane %v2823_v40, 1 }
 0x317   :  { %v2828_v36 = vsel %vm280_vm5, %v1065_v19, %v1066_v37 }
 0x318   :  { %v2831_v25 = vmax.f32 %v1112_v20, %v2828_v36  ;;  %v1017_v44 = vpop.f32.mrf.mxu1  ;;  %v1032_v41 = vpop.f32.mrf.mxu3 }
 0x319   :  { %v1018_v15 = vadd.f32 %v2764_v51, %v1017_v44  ;;  %v1033_v0 = vadd.f32 %v2764_v51, %v1032_v41 }
 0x31b   :  { %v1051_v52 = vmax.f32 %v1018_v15, 0.0  ;;  %v1056_v14 = vmax.f32 %v1033_v0, 0.0 }
 0x31d   :  { %v1067_v55 = vrot.slane %v1051_v52, 1  ;;  %v1072_v44 = vrot.slane %v1056_v14, 1 }
 0x31f   :  { %v2840_v57 = vsel %vm280_vm5, %v1066_v37, %v1067_v55 }
 0x320   :  { %v1020_v45 = vpop.f32.mrf.mxu1  ;;  %v1035_v35 = vpop.f32.mrf.mxu3  ;;  %v1098_v60 = vmax.f32 %v2823_v40, %v2840_v57 }
 0x321   :  { %v1021_v5 = vadd.f32 %v2764_v51, %v1020_v45  ;;  %v1036_v3 = vadd.f32 %v2764_v51, %v1035_v35 }
 0x322   :  { %v1114_v7 = vmax.f32 %v1098_v60, %v1051_v52 }
 0x323   :  { %v1052_v26 = vmax.f32 %v1021_v5, 0.0  ;;  %v1057_v38 = vmax.f32 %v1036_v3, 0.0 }
 0x325   :  { %v1068_v46 = vrot.slane %v1052_v26, 1  ;;  %v1073_v33 = vrot.slane %v1057_v38, 1 }
 0x327   :  { %v1083_v50 = vsel %vm280_vm5, %v1067_v55, %v1068_v46  ;;  %v1078_v35 = vsel %vm280_vm5, %v1072_v44, %v1073_v33 }
 0x328   :  { %v1023_v32 = vpop.f32.mrf.mxu1  ;;  %v1038_v39 = vpop.f32.mrf.mxu3  ;;  %v1099_v59 = vmax.f32 %v1051_v52, %v1083_v50  ;;  %v2851_v10 = vmax.f32 %v1114_v7, %v1083_v50 }
 0x329   :  { %v1024_v53 = vadd.f32 %v2764_v51, %v1023_v32  ;;  %v1039_v29 = vadd.f32 %v2764_v51, %v1038_v39 }
 0x32a   :  { %v1115_v8 = vmax.f32 %v1099_v59, %v1052_v26  ;;  %v1146_v58 = vrot.slane %v2851_v10, 2 }
 0x32b   :  { %v1053_v49 = vmax.f32 %v1024_v53, 0.0  ;;  %v1058_v41 = vmax.f32 %v1039_v29, 0.0 }
 0x32d   :  { %v1069_v4 = vrot.slane %v1053_v49, 1 }
 0x32f   :  { %v1082_v6 = vsel %vm280_vm5, %v1068_v46, %v1069_v4  ;;  %v1074_v46 = vrot.slane %v1058_v41, 1 }
 0x330   :  { %v1100_v1 = vmax.f32 %v1052_v26, %v1082_v6  ;;  %v2849_v43 = vmax.f32 %v1115_v8, %v1082_v6 }
 0x332   :  { %v1116_v11 = vmax.f32 %v1100_v1, %v1053_v49  ;;  %v1147_v61 = vrot.slane %v2849_v43, 2 }
 0x334   :  { %v1041_v48 = vpop.f32.mrf.mxu3  ;;  %v1165_v5 = vsel %vm1156_vm12, %v1146_v58, %v1147_v61 }
 0x335   :  { %v1042_v18 = vadd.f32 %v2764_v51, %v1041_v48 }
 0x336   :  { %v1026_v56 = vpop.f32.mrf.mxu1 }
 0x337   :  { %v1027_v16 = vadd.f32 %v2764_v51, %v1026_v56  ;;  %v1059_v20 = vmax.f32 %v1042_v18, 0.0 }
 0x339   :  { %v1054_v28 = vmax.f32 %v1027_v16, 0.0  ;;  %v1075_v26 = vrot.slane %v1059_v20, 1  ;;  %v1077_v16 = vsel %vm280_vm5, %v1073_v33, %v1074_v46 }
 0x33b   :  { %v1070_v42 = vrot.slane %v1054_v28, 1  ;;  %v1076_v60 = vsel %vm280_vm5, %v1074_v46, %v1075_v26  ;;  %v1091_v56 = vsel %vm280_vm5, %v1075_v26, %v1060_v2  ;;  %v1762_v46 = vpack.i.bf16 %v2851_v10, %v2849_v43 }
 0x33c   :  { %v1107_v7 = vmax.f32 %v1059_v20, %v1091_v56 }
 0x33d   :  { %v1081_v13 = vsel %vm280_vm5, %v1069_v4, %v1070_v42  ;;  %v1104_v4 = vmax.f32 %v1056_v14, %v1078_v35 }
 0x33e   :  { %v2857_v21 = vmax.f32 %v1116_v11, %v1081_v13  ;;  %v1029_v62 = vpop.f32.mrf.mxu1  ;;  %v1101_v30 = vmax.f32 %v1053_v49, %v1081_v13  ;;  %v1123_v29 = vmax.f32 %v1107_v7, %v2768_v54 }
 0x33f   :  { %v1030_v19 = vadd.f32 %v2764_v51, %v1029_v62  ;;  %v1120_v1 = vmax.f32 %v1104_v4, %v1057_v38 }
 0x340   :  { %v1148_v34 = vrot.slane %v2857_v21, 2  ;;  %v1117_v32 = vmax.f32 %v1101_v30, %v1054_v28  ;;  %v2917_v54 = vmax.f32 %v1123_v29, %v2776_v9 }
 0x341   :  { %v1055_v37 = vmax.f32 %v1030_v19, 0.0  ;;  %v2898_v11 = vmax.f32 %v1120_v1, %v1077_v16 }
 0x342   :  { %v1164_v45 = vsel %vm1156_vm12, %v1147_v61, %v1148_v34 }
 0x343   :  { %v1071_v15 = vrot.slane %v1055_v37, 1  ;;  %v2869_v51 = vpack.i.bf16 %v1165_v5, %v1164_v45  ;;  %v1155_v45 = vrot.slane %v2917_v54, 2 }
 0x345   :  { %v1079_v53 = vsel %vm280_vm5, %v1071_v15, %v1072_v44  ;;  %v1080_v52 = vsel %vm280_vm5, %v1070_v42, %v1071_v15  ;;  %1703 = vrot.lane.b32.xlu0 %v2869_v51, %s1860_s22  ;;  %v1105_v42 = vmax.f32 %v1057_v38, %v1077_v16  ;;  %v1152_v38 = vrot.slane %v2898_v11, 2 }
 0x346   :  { %v1102_v49 = vmax.f32 %v1054_v28, %v1080_v52  ;;  %v1103_v55 = vmax.f32 %v1055_v37, %v1079_v53  ;;  %v2879_v50 = vmax.f32 %v1117_v32, %v1080_v52  ;;  %v1106_v28 = vmax.f32 %v1058_v41, %v1076_v60 }
 0x347   :  { %v1121_v19 = vmax.f32 %v1105_v42, %v1058_v41  ;;  %v1172_v5 = vsel %vm1156_vm12, %v1155_v45, %v1140_v27 }
 0x348   :  { %v1118_v39 = vmax.f32 %v1102_v49, %v1055_v37  ;;  %v1119_v59 = vmax.f32 %v1103_v55, %v1056_v14  ;;  %v1707_v6 = vpack.i.bf16 %v2857_v21, %v2879_v50  ;;  %v1149_v3 = vrot.slane %v2879_v50, 2 }
 0x349   :  { %v1122_v14 = vmax.f32 %v1106_v28, %v1059_v20  ;;  %v2912_v33 = vmax.f32 %v1121_v19, %v1076_v60  ;;  %v1144_v49 = vrot.slane %v2831_v25, 2 }
 0x34a   :  { %v2891_v8 = vmax.f32 %v1118_v39, %v1079_v53  ;;  %1708 = vrot.lane.b32.xlu1 %v1707_v6, %s1858_s6  ;;  %v2896_v48 = vmax.f32 %v1119_v59, %v1078_v35  ;;  %v1163_v18 = vsel %vm1156_vm12, %v1148_v34, %v1149_v3  ;;  %v1097_v35 = vmax.f32 %v2802_v23, %v2828_v36 }
 0x34b   :  { %v2914_v30 = vmax.f32 %v1122_v14, %v1091_v56  ;;  %v1737_v44 = vpack.i.bf16 %v2898_v11, %v2912_v33  ;;  %v1153_v26 = vrot.slane %v2912_v33, 2  ;;  %v1143_v59 = vrot.slane %v2819_v31, 2 }
 0x34c   :  { %v1150_v0 = vrot.slane %v2891_v8, 2  ;;  %v1722_v62 = vpack.i.bf16 %v2891_v8, %v2896_v48  ;;  %v1151_v61 = vrot.slane %v2896_v48, 2  ;;  %v1113_v53 = vmax.f32 %v1097_v35, %v2823_v40 }
 0x34d   :  { %v1154_v41 = vrot.slane %v2914_v30, 2  ;;  %v1742_v32 = vpack.i.bf16 %v2914_v30, %v2917_v54  ;;  %v1159_v23 = vsel %vm1156_vm12, %v1152_v38, %v1153_v26  ;;  %v1168_v6 = vsel %vm1156_vm12, %v1143_v59, %v1144_v49 }
 0x34e   :  { %v1162_v2 = vsel %vm1156_vm12, %v1149_v3, %v1150_v0  ;;  %v1160_v34 = vsel %vm1156_vm12, %v1151_v61, %v1152_v38  ;;  %v1161_v20 = vsel %vm1156_vm12, %v1150_v0, %v1151_v61  ;;  %v2948_v52 = vmax.f32 %v1113_v53, %v2840_v57 }
 0x34f   :  { %v1717_v13 = vpack.i.bf16 %v1163_v18, %v1162_v2  ;;  %v1732_v37 = vpack.i.bf16 %v1161_v20, %v1160_v34  ;;  %v1157_v9 = vsel %vm1156_vm12, %v1154_v41, %v1155_v45  ;;  %v1158_v27 = vsel %vm1156_vm12, %v1153_v26, %v1154_v41 }
 0x350   :  { %v1767_v15 = vpack.i.bf16 %v1157_v9, %v1172_v5  ;;  %v1772_v36 = vpack.i.bf16 %v1159_v23, %v1158_v27  ;;  %v1145_v40 = vrot.slane %v2948_v52, 2  ;;  %v1787_v39 = vpack.i.bf16 %v2831_v25, %v2948_v52 }
 0x351   :  { %1718 = vrot.lane.b32.xlu2 %v1717_v13, %s1859_s21  ;;  %1713 = vrot.lane.b32.xlu0 %v1717_v13, %s1860_s22  ;;  %v1802_v56 = vpack.i.bf16 %v2795_v17, %v2819_v31 }
 0x352   :  { %1723 = vrot.lane.b32.xlu1 %v1722_v62, %s1858_s6  ;;  %v1166_v57 = vsel %vm1156_vm12, %v1145_v40, %v1146_v58  ;;  %v1167_v55 = vsel %vm1156_vm12, %v1144_v49, %v1145_v40  ;;  %v1169_v58 = vsel %vm1156_vm12, %v1142_v24, %v1143_v59 }
 0x353   :  { %v1757_v4 = vpack.i.bf16 %v1167_v55, %v1166_v57  ;;  %v1782_v60 = vpack.i.bf16 %v1169_v58, %v1168_v6  ;;  %v1434_v55 = vld [vmem:[%s3256_s7 + $0x68] sm:$0xff] }
 0x359   :  { %1733 = vrot.lane.b32.xlu2 %v1732_v37, %s1859_s21  ;;  %1728 = vrot.lane.b32.xlu0 %v1732_v37, %s1860_s22 }
 0x35a   :  { %1738 = vrot.lane.b32.xlu1 %v1737_v44, %s1858_s6 }
 0x361   :  { %1768 = vrot.lane.b32.xlu2 %v1767_v15, %s1859_s21  ;;  %1748 = vrot.lane.b32.xlu0 %v1767_v15, %s1860_s22 }
 0x362   :  { %1743 = vrot.lane.b32.xlu1 %v1742_v32, %s1858_s6  ;;  %v1435_v32 = vld [vmem:[%s3256_s7 + $0x70] sm:$0xff] }
 0x369   :  { %1773 = vrot.lane.b32.xlu2 %v1772_v36, %s1859_s21  ;;  %1753 = vrot.lane.b32.xlu0 %v1772_v36, %s1860_s22 }
 0x36a   :  { %1763 = vrot.lane.b32.xlu1 %v1762_v46, %s1858_s6 }
 0x371   :  { %1778 = vrot.lane.b32.xlu2 %v2869_v51, %s1859_s21  ;;  %1758 = vrot.lane.b32.xlu0 %v1757_v4, %s1860_s22  ;;  %v1699_v51 = vpop.permute.xlu2 %1698 }
 0x372   :  { %1788 = vrot.lane.b32.xlu1 %v1787_v39, %s1858_s6  ;;  %v1700_v19 = vunpack.i.l.bf16 %v1699_v51  ;;  %v1701_v44 = vunpack.i.h.bf16 %v1699_v51 }
 0x376   :  { %v1694_v16 = vpop.permute.xlu1 %1693 }
 0x377   :  { %v1696_v29 = vunpack.i.h.bf16 %v1694_v16  ;;  %v1695_v62 = vunpack.i.l.bf16 %v1694_v16 }
 0x379   :  { %1793 = vrot.lane.b32.xlu2 %v1757_v4, %s1859_s21  ;;  %1783 = vrot.lane.b32.xlu0 %v1782_v60, %s1860_s22 }
 0x37a   :  { %1803 = vrot.lane.b32.xlu1 %v1802_v56, %s1858_s6 }
 0x381   :  { %1808 = vrot.lane.b32.xlu2 %v1782_v60, %s1859_s21  ;;  %1798 = vrot.lane.b32.xlu0 %v2813_v22, %s1860_s22  ;;  %v1433_v60 = vld [vmem:[%s3256_s7 + $0x60] sm:$0xff] }
 0x3ab   :  { %v2986_v3 = vpop.permute.xlu2 %1718 }
 0x3b3   :  { %v2992_v1 = vpop.permute.xlu2 %1733 }
 0x3b7   :  { %v2988_v63 = vpop.permute.xlu0 %1703 }
 0x3bb   :  { %v1769_v0 = vpop.permute.xlu2 %1768 }
 0x3bc   :  { %v2990_v24 = vpop.permute.xlu1 %1708  ;;  %v1770_v26 = vunpack.i.l.bf16 %v1769_v0  ;;  %v1771_v58 = vunpack.i.h.bf16 %v1769_v0 }
 0x3c3   :  { %v2994_v28 = vpop.permute.xlu0 %1713  ;;  %v2998_v61 = vpop.permute.xlu2 %1773 }
 0x3c4   :  { %v2996_v7 = vpop.permute.xlu1 %1723  ;;  %v1715_v36 = vunpack.i.l.bf16 %v2994_v28  ;;  %v1775_v16 = vunpack.i.l.bf16 %v2998_v61 }
 0x3c5   :  { %v1725_v56 = vunpack.i.l.bf16 %v2996_v7 }
 0x3cb   :  { %v1729_v42 = vpop.permute.xlu0 %1728  ;;  %v3026_v4 = vpop.permute.xlu2 %1778 }
 0x3cc   :  { %v1739_v2 = vpop.permute.xlu1 %1738  ;;  %v1730_v45 = vunpack.i.l.bf16 %v1729_v42  ;;  %v1731_v15 = vunpack.i.h.bf16 %v1729_v42  ;;  %v1726_v42 = vunpack.i.h.bf16 %v2996_v7  ;;  %v1710_v7 = vunpack.i.l.bf16 %v2990_v24 }
 0x3cd   :  { %v1740_v53 = vunpack.i.l.bf16 %v1739_v2  ;;  %v1741_v39 = vunpack.i.h.bf16 %v1739_v2 }
 0x3ce   :  { %v1361_v57 = vsel %vm1349_vm13, %v2896_v48, %v1730_v45  ;;  %v1360_v48 = vsel %vm1349_vm13, %v2891_v8, %v1731_v15  ;;  %v1432_v8 = vld [vmem:[%s3256_s7 + $0x58] sm:$0xff] }
 0x3cf   :  { %v1378_v51 = vsel %vm1366_vm14, %v1361_v57, %v1740_v53  ;;  %v1780_v57 = vunpack.i.l.bf16 %v3026_v4 }
 0x3d3   :  { %v1749_v18 = vpop.permute.xlu0 %1748  ;;  %v1794_v15 = vpop.permute.xlu2 %1793 }
 0x3d4   :  { %v1751_v13 = vunpack.i.h.bf16 %v1749_v18  ;;  %v1750_v22 = vunpack.i.l.bf16 %v1749_v18  ;;  %v1744_v14 = vpop.permute.xlu1 %1743  ;;  %v1377_v18 = vsel %vm1366_vm14, %v1360_v48, %v1741_v39 }
 0x3d5   :  { %v1746_v27 = vunpack.i.h.bf16 %v1744_v14  ;;  %v1745_v23 = vunpack.i.l.bf16 %v1744_v14  ;;  %v1395_v14 = vsel %vm1383_vm15, %v1378_v51, %v1775_v16 }
 0x3d6   :  { %v1365_v38 = vsel %vm1349_vm13, %v2917_v54, %v1750_v22  ;;  %v1364_v34 = vsel %vm1349_vm13, %v2914_v30, %v1751_v13  ;;  %v1436_v30 = vld [vmem:[%s3256_s7 + $0x78] sm:$0xff]  ;;  %v1705_v13 = vunpack.i.l.bf16 %v2988_v63  ;;  %v1776_v22 = vunpack.i.h.bf16 %v2998_v61 }
 0x3d7   :  { %v1382_v20 = vsel %vm1366_vm14, %v1365_v38, %v1695_v62  ;;  %v1381_v37 = vsel %vm1366_vm14, %v1364_v34, %v1696_v29  ;;  %1441 = vmatpush.msra.mxu3 %v1436_v30  ;;  %v1431_v29 = vld [vmem:[%s3256_s7 + $0x50] sm:$0xff]  ;;  %v1706_v38 = vunpack.i.h.bf16 %v2988_v63 }
 0x3d8   :  { %v1399_v41 = vsel %vm1383_vm15, %v1382_v20, %v1700_v19  ;;  %v1398_v9 = vsel %vm1383_vm15, %v1381_v37, %v1701_v44  ;;  %v1735_v19 = vunpack.i.l.bf16 %v2992_v1  ;;  %v1394_v34 = vsel %vm1383_vm15, %v1377_v18, %v1776_v22  ;;  %v1423_v18 = vld [vmem:[%s3256_s7 + $0x10] sm:$0xff] }
 0x3d9   :  { %1401 = vmatpush.msra.mxu2 %v1399_v41  ;;  %1442 = vmatpush.msra.mxu3 %v1435_v32  ;;  %v1711_v20 = vunpack.i.h.bf16 %v2990_v24  ;;  %v1736_v44 = vunpack.i.h.bf16 %v2992_v1  ;;  %v1357_v63 = vsel %vm1349_vm13, %v2849_v43, %v1705_v13  ;;  %v1428_v43 = vld [vmem:[%s3256_s7 + $0x38] sm:$0xff]  ;;  %v1721_v32 = vunpack.i.h.bf16 %v2986_v3 }
 0x3da   :  { %v1374_v24 = vsel %vm1366_vm14, %v1357_v63, %v1710_v7  ;;  %v1478_v63 = vld [vmem:[%s3259_s10 + $0x80] sm:$0xff] }
 0x3db   :  { %v1754_v5 = vpop.permute.xlu0 %1753  ;;  %1402 = vmatpush.msra.mxu2 %v1398_v9  ;;  %1443 = vmatpush.msra.mxu3 %v1434_v55  ;;  %v1809_v16 = vpop.permute.xlu2 %1808 }
 0x3dc   :  { %v1756_v54 = vunpack.i.h.bf16 %v1754_v5  ;;  %v1755_v35 = vunpack.i.l.bf16 %v1754_v5  ;;  %v3015_v46 = vpop.permute.xlu1 %1763  ;;  %v1429_v5 = vld [vmem:[%s3256_s7 + $0x40] sm:$0xff] }
 0x3dd   :  { %1444 = vmatpush.msra.mxu3 %v1433_v60  ;;  %v1795_v60 = vunpack.i.l.bf16 %v1794_v15 }
 0x3de   :  { %v1363_v40 = vsel %vm1349_vm13, %v2912_v33, %v1755_v35  ;;  %v1362_v49 = vsel %vm1349_vm13, %v2898_v11, %v1756_v54  ;;  %v1716_v33 = vunpack.i.h.bf16 %v2994_v28  ;;  %v1359_v28 = vsel %vm1349_vm13, %v2879_v50, %v1715_v36 }
 0x3df   :  { %v1380_v59 = vsel %vm1366_vm14, %v1363_v40, %v1745_v23  ;;  %v1379_v6 = vsel %vm1366_vm14, %v1362_v49, %v1746_v27  ;;  %v1376_v62 = vsel %vm1366_vm14, %v1359_v28, %v1725_v56  ;;  %1445 = vmatpush.msra.mxu3 %v1432_v8  ;;  %v1720_v54 = vunpack.i.l.bf16 %v2986_v3  ;;  %v1427_v40 = vld [vmem:[%s3256_s7 + $0x30] sm:$0xff] }
 0x3e0   :  { %v1397_v11 = vsel %vm1383_vm15, %v1380_v59, %v1770_v26  ;;  %v1396_v0 = vsel %vm1383_vm15, %v1379_v6, %v1771_v58  ;;  %v1358_v50 = vsel %vm1349_vm13, %v2857_v21, %v1716_v33  ;;  %v1430_v21 = vld [vmem:[%s3256_s7 + $0x48] sm:$0xff]  ;;  %v1393_v9 = vsel %vm1383_vm15, %v1376_v62, %v1735_v19 }
 0x3e1   :  { %1403 = vmatpush.msra.mxu2 %v1397_v11  ;;  %v1375_v37 = vsel %vm1366_vm14, %v1358_v50, %v1726_v42  ;;  %1446 = vmatpush.msra.mxu3 %v1431_v29  ;;  %v1356_v35 = vsel %vm1349_vm13, %v2851_v10, %v1706_v38  ;;  %v1765_v26 = vunpack.i.l.bf16 %v3015_v46  ;;  %v1391_v10 = vsel %vm1383_vm15, %v1374_v24, %v1720_v54  ;;  %v1422_v62 = vld [vmem:[%s3256_s7 + $0x8] sm:$0xff]  ;;  %v1470_v54 = vld [vmem:[%s3259_s10 + $0x40] sm:$0xff] }
 0x3e2   :  { %v1392_v1 = vsel %vm1383_vm15, %v1375_v37, %v1736_v44  ;;  %v1373_v27 = vsel %vm1366_vm14, %v1356_v35, %v1711_v20  ;;  %v1766_v3 = vunpack.i.h.bf16 %v3015_v46  ;;  %v1781_v46 = vunpack.i.h.bf16 %v3026_v4  ;;  %v1424_v4 = vld [vmem:[%s3256_s7 + $0x18] sm:$0xff]  ;;  %v1490_v20 = vld [vmem:[%s3259_s10 + $0xe0] sm:$0xff]  ;;  %v1491_v37 = vld [vmem:[%s3259_s10 + $0xe8] sm:$0xff] }
 0x3e3   :  { %v1759_v2 = vpop.permute.xlu0 %1758  ;;  %1404 = vmatpush.msra.mxu2 %v1396_v0  ;;  %1447 = vmatpush.msra.mxu3 %v1430_v21  ;;  %v1390_v55 = vsel %vm1383_vm15, %v1373_v27, %v1721_v32  ;;  %v1796_v28 = vunpack.i.h.bf16 %v1794_v15  ;;  %v1486_v44 = vld [vmem:[%s3259_s10 + $0xc0] sm:$0xff]  ;;  %v1475_v24 = vld [vmem:[%s3259_s10 + $0x68] sm:$0xff] }
 0x3e4   :  { %v1760_v61 = vunpack.i.l.bf16 %v1759_v2  ;;  %v1761_v41 = vunpack.i.h.bf16 %v1759_v2  ;;  %v1789_v45 = vpop.permute.xlu1 %1788  ;;  %v1474_v15 = vld [vmem:[%s3259_s10 + $0x60] sm:$0xff]  ;;  %v1463_v32 = vld [vmem:[%s3259_s10 + $0x8] sm:$0xff] }
 0x3e5   :  { %1405 = vmatpush.msra.mxu2 %v1395_v14  ;;  %1448 = vmatpush.msra.mxu3 %v1429_v5  ;;  %v1790_v59 = vunpack.i.l.bf16 %v1789_v45  ;;  %v1791_v11 = vunpack.i.h.bf16 %v1789_v45  ;;  %v1810_v14 = vunpack.i.l.bf16 %v1809_v16  ;;  %v1482_v45 = vld [vmem:[%s3259_s10 + $0xa0] sm:$0xff]  ;;  %v1479_v5 = vld [vmem:[%s3259_s10 + $0x88] sm:$0xff] }
 0x3e6   :  { %v1355_v30 = vsel %vm1349_vm13, %v2948_v52, %v1760_v61  ;;  %v1354_v52 = vsel %vm1349_vm13, %v2831_v25, %v1761_v41  ;;  %v1426_v25 = vld [vmem:[%s3256_s7 + $0x28] sm:$0xff]  ;;  %v1811_v61 = vunpack.i.h.bf16 %v1809_v16  ;;  %v1466_v35 = vld [vmem:[%s3259_s10 + $0x20] sm:$0xff]  ;;  %v1599_v16 = vld [vmem:[#allocation2 + $0x50] sm:$0xff] }
 0x3e7   :  { %1406 = vmatpush.msra.mxu2 %v1394_v34  ;;  %v1372_v49 = vsel %vm1366_vm14, %v1355_v30, %v1765_v26  ;;  %1449 = vmatpush.msra.mxu3 %v1428_v43  ;;  %v1371_v6 = vsel %vm1366_vm14, %v1354_v52, %v1766_v3  ;;  %v1487_v41 = vld [vmem:[%s3259_s10 + $0xc8] sm:$0xff]  ;;  %v1462_v43 = vld [vmem:[%s3259_s10] sm:$0xff]  ;;  %v1492_v26 = vld [vmem:[%s3259_s10 + $0xf0] sm:$0xff] }
 0x3e8   :  { %v1389_v58 = vsel %vm1383_vm15, %v1372_v49, %v1780_v57  ;;  %v1388_v51 = vsel %vm1383_vm15, %v1371_v6, %v1781_v46  ;;  %v1467_v30 = vld [vmem:[%s3259_s10 + $0x28] sm:$0xff]  ;;  %v1485_v52 = vld [vmem:[%s3259_s10 + $0xb8] sm:$0xff]  ;;  %v1476_v49 = vld [vmem:[%s3259_s10 + $0x70] sm:$0xff] }
 0x3e9   :  { %1407 = vmatpush.msra.mxu2 %v1393_v9  ;;  %1450 = vmatpush.msra.mxu3 %v1427_v40  ;;  %v1483_v9 = vld [vmem:[%s3259_s10 + $0xa8] sm:$0xff]  ;;  %v1480_v40 = vld [vmem:[%s3259_s10 + $0x90] sm:$0xff]  ;;  %v1481_v3 = vld [vmem:[%s3259_s10 + $0x98] sm:$0xff] }
 0x3ea   :  { %v1477_v57 = vld [vmem:[%s3259_s10 + $0x78] sm:$0xff]  ;;  %v1464_v6 = vld [vmem:[%s3259_s10 + $0x10] sm:$0xff] }
 0x3eb   :  { %v1784_v53 = vpop.permute.xlu0 %1783  ;;  %1408 = vmatpush.msra.mxu2 %v1392_v1  ;;  %1451 = vmatpush.msra.mxu3 %v1426_v25  ;;  %v1471_v1 = vld [vmem:[%s3259_s10 + $0x48] sm:$0xff]  ;;  %v1468_v25 = vld [vmem:[%s3259_s10 + $0x30] sm:$0xff]  ;;  %v1465_v46 = vld [vmem:[%s3259_s10 + $0x18] sm:$0xff] }
 0x3ec   :  { %v1786_v23 = vunpack.i.h.bf16 %v1784_v53  ;;  %v1785_v36 = vunpack.i.l.bf16 %v1784_v53  ;;  %v1804_v56 = vpop.permute.xlu1 %1803  ;;  %v1493_v53 = vld [vmem:[%s3259_s10 + $0xf8] sm:$0xff] }
 0x3ed   :  { %1409 = vmatpush.msra.mxu2 %v1391_v10  ;;  %v1806_v13 = vunpack.i.h.bf16 %v1804_v56  ;;  %v1805_v22 = vunpack.i.l.bf16 %v1804_v56  ;;  %v1484_v10 = vld [vmem:[%s3259_s10 + $0xb0] sm:$0xff]  ;;  %v1602_v56 = vld [vmem:[#allocation2 + $0x68] sm:$0xff] }
 0x3ee   :  { %v1353_v39 = vsel %vm1349_vm13, %v2819_v31, %v1785_v36  ;;  %v1352_v33 = vsel %vm1349_vm13, %v2795_v17, %v1786_v23  ;;  %v1425_v31 = vld [vmem:[%s3256_s7 + $0x20] sm:$0xff]  ;;  %v1488_v23 = vld [vmem:[%s3259_s10 + $0xd0] sm:$0xff]  ;;  %v1489_v36 = vld [vmem:[%s3259_s10 + $0xd8] sm:$0xff] }
 0x3ef   :  { %1410 = vmatpush.msra.mxu2 %v1390_v55  ;;  %v1370_v48 = vsel %vm1366_vm14, %v1353_v39, %v1790_v59  ;;  %v1369_v17 = vsel %vm1366_vm14, %v1352_v33, %v1791_v11  ;;  %1452 = vmatpush.msra.mxu3 %v1425_v31  ;;  %v1472_v55 = vld [vmem:[%s3259_s10 + $0x50] sm:$0xff]  ;;  %v1473_v39 = vld [vmem:[%s3259_s10 + $0x58] sm:$0xff] }
 0x3f0   :  { %v1387_v2 = vsel %vm1383_vm15, %v1370_v48, %v1795_v60  ;;  %v1386_v50 = vsel %vm1383_vm15, %v1369_v17, %v1796_v28  ;;  %v1469_v59 = vld [vmem:[%s3259_s10 + $0x38] sm:$0xff]  ;;  %v1603_v60 = vld [vmem:[#allocation2 + $0x70] sm:$0xff]  ;;  %v1597_v17 = vld [vmem:[#allocation2 + $0x40] sm:$0xff] }
 0x3f1   :  { %1411 = vmatpush.msra.mxu2 %v1389_v58  ;;  %1453 = vmatpush.msra.mxu3 %v1424_v4  ;;  %v1816_v58 = vld [vmem:[%s3257_s8] ss:$0 sm:$0xff]  ;;  %v1604_v48 = vld [vmem:[#allocation2 + $0x78] sm:$0xff] }
 0x3f2   :  { %v1600_v4 = vld [vmem:[#allocation2 + $0x58] sm:$0xff] }
 0x3f3   :  { %v1799_v0 = vpop.permute.xlu0 %1798  ;;  %1412 = vmatpush.msra.mxu2 %v1388_v51  ;;  %1454 = vmatpush.msra.mxu3 %v1423_v18  ;;  %v1601_v51 = vld [vmem:[#allocation2 + $0x60] sm:$0xff]  ;;  %v1596_v28 = vld [vmem:[#allocation2 + $0x38] sm:$0xff] }
 0x3f4   :  { %v1801_v8 = vunpack.i.h.bf16 %v1799_v0  ;;  %v1800_v42 = vunpack.i.l.bf16 %v1799_v0  ;;  %v1598_v0 = vld [vmem:[#allocation2 + $0x48] sm:$0xff]  ;;  %v1592_v18 = vld [vmem:[#allocation2 + $0x18] sm:$0xff] }
 0x3f5   :  { %1413 = vmatpush.msra.mxu2 %v1387_v2  ;;  %1455 = vmatpush.msra.mxu3 %v1422_v62  ;;  %v1593_v2 = vld [vmem:[#allocation2 + $0x20] sm:$0xff] }
 0x3f6   :  { %v1351_v29 = vsel %vm1349_vm13, %v2787_v47, %v1800_v42  ;;  %v1350_v7 = vsel %vm1349_vm13, %v2785_v12, %v1801_v8  ;;  %v1421_v47 = vld [vmem:[%s3256_s7] sm:$0xff]  ;;  %v1595_v8 = vld [vmem:[#allocation2 + $0x30] sm:$0xff]  ;;  %v1594_v42 = vld [vmem:[#allocation2 + $0x28] sm:$0xff] }
 0x3f7   :  { %1414 = vmatpush.msra.mxu2 %v1386_v50  ;;  %v1368_v19 = vsel %vm1366_vm14, %v1351_v29, %v1805_v22  ;;  %v1367_v38 = vsel %vm1366_vm14, %v1350_v7, %v1806_v13  ;;  %v1400_v12 = vld [vmem:[%s3258_s9] sm:$0xff]  ;;  %1456 = vmatpush.msra.mxu3 %v1421_v47  ;;  %v1591_v13 = vld [vmem:[#allocation2 + $0x10] sm:$0xff]  ;;  %v1590_v22 = vld [vmem:[#allocation2 + $0x8] sm:$0xff] }
 0x3f8   :  { %v1385_v34 = vsel %vm1383_vm15, %v1368_v19, %v1810_v14  ;;  %v1384_v21 = vsel %vm1383_vm15, %v1367_v38, %v1811_v61  ;;  %v1589_v14 = vld [vmem:[#allocation2] sm:$0xff] }
 0x3f9   :  { %1415 = vmatpush.msra.mxu2 %v1385_v34  ;;  %1525 = vmatpush.msrb.mxu3 %v1491_v37 }
 0x3fb   :  { %1416 = vmatpush.msra.mxu2 %v1384_v21  ;;  %1526 = vmatpush.msrb.mxu3 %v1487_v41 }
 0x3fc   :  { %1417 = vmatmul.f32.vlgmr.msra.gmra.mxu2 %v1400_v12  ;;  %v1817_v12 = vld [vmem:[%s3260_s11] ss:$0 sm:$0xff] }
 0x3fd   :  { %1505 = vmatpush.msrb.mxu2 %v1490_v20  ;;  %1527 = vmatpush.msrb.mxu3 %v1483_v9 }
 0x3ff   :  { %1506 = vmatpush.msrb.mxu2 %v1486_v44  ;;  %1528 = vmatpush.msrb.mxu3 %v1479_v5  ;;  %v1818_v44 = vld [vmem:[%s3262_s13] ss:$0 sm:$0xff] }
 0x401   :  { %1507 = vmatpush.msrb.mxu2 %v1482_v45  ;;  %1529 = vmatpush.msrb.mxu3 %v1475_v24 }
 0x403   :  { %1508 = vmatpush.msrb.mxu2 %v1478_v63  ;;  %1530 = vmatpush.msrb.mxu3 %v1471_v1 }
 0x405   :  { %1509 = vmatpush.msrb.mxu2 %v1474_v15  ;;  %1531 = vmatpush.msrb.mxu3 %v1467_v30 }
 0x407   :  { %1510 = vmatpush.msrb.mxu2 %v1470_v54  ;;  %1532 = vmatpush.msrb.mxu3 %v1463_v32 }
 0x409   :  { %1511 = vmatpush.msrb.mxu2 %v1466_v35 }
 0x40b   :  { %1512 = vmatpush.msrb.mxu2 %v1462_v43 }
 0x40d   :  { %1545 = vmatpush.msra.mxu2 %v1492_v26 }
 0x40f   :  { %1546 = vmatpush.msra.mxu2 %v1488_v23 }
 0x411   :  { %1547 = vmatpush.msra.mxu2 %v1484_v10 }
 0x413   :  { %1548 = vmatpush.msra.mxu2 %v1480_v40 }
 0x415   :  { %1549 = vmatpush.msra.mxu2 %v1476_v49 }
 0x417   :  { %1550 = vmatpush.msra.mxu2 %v1472_v55 }
 0x419   :  { %1551 = vmatpush.msra.mxu2 %v1468_v25 }
 0x41b   :  { %1552 = vmatpush.msra.mxu2 %v1464_v6 }
 0x47f   :  { %v1418_v27 = vpop.f32.mrf.mxu2 }
 0x480   :  { %1457 = vmatmul.f32.vlgmr.msra.gmra.mxu3 %v1418_v27 }
 0x481   :  { %1565 = vmatpush.msra.mxu3 %v1493_v53 }
 0x483   :  { %1566 = vmatpush.msra.mxu3 %v1489_v36 }
 0x485   :  { %1567 = vmatpush.msra.mxu3 %v1485_v52 }
 0x487   :  { %1568 = vmatpush.msra.mxu3 %v1481_v3 }
 0x489   :  { %1569 = vmatpush.msra.mxu3 %v1477_v57 }
 0x48b   :  { %1570 = vmatpush.msra.mxu3 %v1473_v39 }
 0x48d   :  { %1571 = vmatpush.msra.mxu3 %v1469_v59 }
 0x48f   :  { %1572 = vmatpush.msra.mxu3 %v1465_v46 }
 0x503   :  { %v1458_v33 = vpop.f32.mrf.mxu3 }
 0x504   :  { %v1459_v31 = vadd.f32 %v1816_v58, %v1458_v33 }
 0x506   :  { %v1461_v11 = vmax.f32 %v1459_v31, 0.0 }
 0x508   :  { %1668 = vmatmul.msk.f32.vlgmr.msrb.gmra.mxu2 %vm1366_vm14, %v1461_v11  ;;  %1669 = vmatmul.msk.f32.vlgmr.msrb.gmra.mxu3 %vm1366_vm14, %v1461_v11 }
 0x509   :  { %1609 = vmatpush.msrb.mxu2 %v1604_v48 }
 0x50b   :  { %1610 = vmatpush.msrb.mxu2 %v1603_v60 }
 0x50d   :  { %1611 = vmatpush.msrb.mxu2 %v1602_v56 }
 0x50f   :  { %1612 = vmatpush.msrb.mxu2 %v1601_v51 }
 0x510   :  { %1670 = vmatmul.msk.f32.vlgmr.msra.gmra.mxu2 %vm1366_vm14, %v1461_v11  ;;  %1671 = vmatmul.msk.f32.vlgmr.msra.gmra.mxu3 %vm1366_vm14, %v1461_v11 }
 0x511   :  { %1613 = vmatpush.msrb.mxu2 %v1600_v4 }
 0x513   :  { %1614 = vmatpush.msrb.mxu2 %v1599_v16 }
 0x515   :  { %1615 = vmatpush.msrb.mxu2 %v1598_v0 }
 0x517   :  { %1616 = vmatpush.msrb.mxu2 %v1597_v17 }
 0x519   :  { %1617 = vmatpush.msrb.mxu2 %v1596_v28 }
 0x51b   :  { %1618 = vmatpush.msrb.mxu2 %v1595_v8 }
 0x51d   :  { %1619 = vmatpush.msrb.mxu2 %v1594_v42 }
 0x51f   :  { %1620 = vmatpush.msrb.mxu2 %v1593_v2 }
 0x521   :  { %1621 = vmatpush.msrb.mxu2 %v1592_v18 }
 0x523   :  { %1622 = vmatpush.msrb.mxu2 %v1591_v13 }
 0x525   :  { %1623 = vmatpush.msrb.mxu2 %v1590_v22 }
 0x527   :  { %1624 = vmatpush.msrb.mxu2 %v1589_v14 }
 0x58b   :  { %v1514_v50 = vpop.f32.mrf.mxu2  ;;  %v1534_v29 = vpop.f32.mrf.mxu3 }
 0x58c   :  { %v1577_v7 = vrot.slane %v1534_v29, 2 }
 0x58e   :  { %v1578_v38 = vadd.f32 %v1577_v7, %v1514_v50 }
 0x593   :  { %v1554_v62 = vpop.f32.mrf.mxu2  ;;  %v1574_v19 = vpop.f32.mrf.mxu3 }
 0x594   :  { %v1579_v61 = vrot.slane %v1554_v62, 4  ;;  %v1581_v47 = vrot.slane %v1574_v19, 6 }
 0x596   :  { %v1580_v34 = vadd.f32 %v1579_v61, %v1578_v38 }
 0x598   :  { %v1582_v21 = vadd.f32 %v1581_v47, %v1580_v34 }
 0x59a   :  { %v1587_v20 = vadd.f32 %v1817_v12, %v1582_v21 }
 0x59c   :  { %v1588_v37 = vmax.f32 %v1587_v20, 0.0 }
 0x59e   :  { %1625 = vmatmul.f32.vlgmr.msrb.gmra.mxu2 %v1588_v37 }
 0x621   :  { %v1626_v41 = vpop.f32.mrf.mxu2 }
 0x622   :  { %v1627_v45 = vadd.f32 %v1818_v44, %v1626_v41 }
 0x624   :  { %1629 = vst [vmem:[%s3263_s14] sm:$0xff] %v1627_v45 }
 0x625   :  { %1634 = vsyncpa [#allocation3], 1 }

</bundles_post_ra>
